<compile_context>
chip_gen: v7x
topology: tpu7x:2x2x1
jax: 0.10.0
libtpu: 0.0.40
codegen_flags: <defaults>
</compile_context>

<pallas_src>
import functools

import jax
import jax.numpy as jnp
from jax.experimental import pallas as pl
from jax.experimental.pallas import tpu as pltpu

_LANE = 128


def _silu(x):
    return x * jax.nn.sigmoid(x)


def _round_up(x, m):
    return ((x + m - 1) // m) * m


def _pad_axis(x, axis, new_size):
    pad = new_size - x.shape[axis]
    if pad == 0:
        return x
    widths = [(0, 0)] * x.ndim
    widths[axis] = (0, pad)
    return jnp.pad(x, widths)


def schnet_conv_kernel(knn_ref,                      # SMEM prefetch: (K*Npad,) int32
                       bf_ref,                       # (K, TM, Rp) bf16
                       ew_ref,                       # (K, TM, Fp) f32  (= h_edge*cutoff/K)
                       h_ref,                        # (N, Fp) f32, resident across grid
                       w1_ref, b1_ref, w2_ref, b2_ref,
                       w3_ref, b3_ref, w4_ref, b4_ref,
                       out_ref,                      # (TM, Fp) f32
                       w_sc,                         # scratch VMEM (K, TM, Fp) f32
                       hmean_sc,                     # scratch VMEM (TM, Fp) f32
                       *, tm, k_nbrs, n_pad):
    f32 = jnp.float32
    bf16 = jnp.bfloat16

    # ---- Stage 1: FGN_MLP1/FGN_MLP2 on radial edge features (bf16 MXU, f32
    # accum), multiplied by the pre-folded (h_edge * cutoff / K) edge weights.
    # Done per neighbour slice to keep vreg live ranges small; result goes to
    # an explicit VMEM scratch instead of spilling.
    for k in range(k_nbrs):
        x = jnp.dot(bf_ref[k], w1_ref[...], preferred_element_type=f32) + b1_ref[...]
        x = _silu(x)
        x = jnp.dot(x.astype(bf16), w2_ref[...], preferred_element_type=f32) + b2_ref[...]
        x = _silu(x)
        w_sc[k] = x * ew_ref[k]                     # (TM, Fp) f32

    # ---- Stage 2: fused gather + weighted sum over the K neighbours.
    # knn indices come from SMEM; h rows are read from the resident VMEM copy.
    base = pl.program_id(0) * tm
    unroll = 8 if tm % 8 == 0 else 1

    def edge_body(i, carry):
        m0 = pl.multiple_of(i * unroll, unroll)
        for u in range(unroll):                      # static unroll (bundle packing)
            m = m0 + u
            acc = None
            for k in range(k_nbrs):                  # static unroll over K
                idx = knn_ref[k * n_pad + base + m]
                hrow = h_ref[pl.ds(idx, 1), :]       # (1, Fp) dynamic row gather
                wrow = w_sc[k, pl.ds(m, 1), :]       # (1, Fp)
                term = hrow * wrow
                acc = term if acc is None else acc + term
            hmean_sc[pl.ds(m, 1), :] = acc           # mean (1/K folded into ew)
        return carry

    jax.lax.fori_loop(0, tm // unroll, edge_body, 0)

    # ---- Stage 3: IB_MLP1 / IB_MLP2 on the reduced per-node features.
    o = jnp.dot(hmean_sc[...].astype(bf16), w3_ref[...], preferred_element_type=f32) + b3_ref[...]
    o = _silu(o)
    o = jnp.dot(o.astype(bf16), w4_ref[...], preferred_element_type=f32) + b4_ref[...]
    o = _silu(o)
    out_ref[...] = o.astype(out_ref.dtype)


def schnet_conv(graph, params):
    """One SchnetConv branch. graph: dict with 'h' [N,F], 'bf' [N,K,R],
    'knn' [N,K] int, 'h_edge' [N,K,F], 'cutoff' [N,K]."""
    h = graph["h"].astype(jnp.float32)
    bf = graph["bf"].astype(jnp.float32)
    knn = graph["knn"].astype(jnp.int32)
    h_edge = graph["h_edge"].astype(jnp.float32)
    cutoff = graph["cutoff"].astype(jnp.float32)

    w1, b1, w2, b2, w3, b3, w4, b4 = params
    n, k = knn.shape
    r = bf.shape[-1]
    f = h.shape[-1]
    hdim = w1.shape[-1]
    assert w2.shape[-1] == f, "in_feats must equal out_feats (h_src * bf product)"

    # lane-dense padded feature dims; node row-block size.
    rp = _round_up(r, _LANE)
    hp = _round_up(hdim, _LANE)
    fp = _round_up(f, _LANE)
    tm = min(512, _round_up(n, 8))
    n_pad = _round_up(n, tm)

    # Edge tensors: fold cutoff AND the 1/K of the neighbour mean into h_edge,
    # go K-major, zero-pad; knn -> flat SMEM prefetch table.
    ew = h_edge * cutoff[..., None] * (1.0 / k)            # (N, K, F)
    ew = jnp.transpose(ew, (1, 0, 2))                      # (K, N, F)
    ew = _pad_axis(_pad_axis(ew, 1, n_pad), 2, fp)         # (K, Npad, Fp) f32

    bf_k = jnp.transpose(bf, (1, 0, 2))                    # (K, N, R)
    bf_k = _pad_axis(_pad_axis(bf_k, 1, n_pad), 2, rp).astype(jnp.bfloat16)

    knn_k = _pad_axis(jnp.transpose(knn, (1, 0)), 1, n_pad)  # (K, Npad) int32
    knn_flat = knn_k.reshape(-1)                           # (K*Npad,) scalar prefetch

    h_p = _pad_axis(h, 1, fp)                              # (N, Fp) f32

    # zero-padded params: weights bf16 for the MXU, biases f32.
    w1p = _pad_axis(_pad_axis(w1, 0, rp), 1, hp).astype(jnp.bfloat16)
    b1p = _pad_axis(b1, 1, hp)
    w2p = _pad_axis(_pad_axis(w2, 0, hp), 1, fp).astype(jnp.bfloat16)
    b2p = _pad_axis(b2, 1, fp)
    w3p = _pad_axis(_pad_axis(w3, 0, fp), 1, fp).astype(jnp.bfloat16)
    b3p = _pad_axis(b3, 1, fp)
    w4p = _pad_axis(_pad_axis(w4, 0, fp), 1, fp).astype(jnp.bfloat16)
    b4p = _pad_axis(b4, 1, fp)
    p_params = (w1p, b1p, w2p, b2p, w3p, b3p, w4p, b4p)

    def edge_map(i, knn_sref):
        return (0, i, 0)

    def const_map(i, knn_sref):
        return (0, 0)

    in_specs = (
        [pl.BlockSpec((k, tm, rp), edge_map),              # bf
         pl.BlockSpec((k, tm, fp), edge_map),              # h_edge * cutoff / K
         pl.BlockSpec(h_p.shape, const_map)]               # h (resident)
        + [pl.BlockSpec(p.shape, const_map) for p in p_params]
    )
    out_spec = pl.BlockSpec((tm, fp), lambda i, knn_sref: (i, 0))

    # VMEM budget: resident h + params + double-buffered blocks + scratches.
    est = (
        int(h_p.size) * 4
        + sum(int(p.size) * p.dtype.itemsize for p in p_params)
        + 2 * (k * tm * rp * 2 + k * tm * fp * 4 + tm * fp * 4)
        + k * tm * fp * 4 + tm * fp * 4
    )
    vmem_limit = int(min(max(2 * est, 32 * 1024 * 1024), 48 * 1024 * 1024))

    kernel = functools.partial(schnet_conv_kernel, tm=tm, k_nbrs=k, n_pad=n_pad)
    out = pl.pallas_call(
        kernel,
        out_shape=jax.ShapeDtypeStruct((n_pad, fp), jnp.float32),
        grid_spec=pltpu.PrefetchScalarGridSpec(
            num_scalar_prefetch=1,
            grid=(n_pad // tm,),
            in_specs=in_specs,
            out_specs=out_spec,
            scratch_shapes=[pltpu.VMEM((k, tm, fp), jnp.float32),
                            pltpu.VMEM((tm, fp), jnp.float32)],
        ),
        compiler_params=pltpu.CompilerParams(
            dimension_semantics=("parallel",),
            vmem_limit_bytes=vmem_limit,
        ),
    )(knn_flat, bf_k, ew, h_p, *p_params)
    return out[:n, :f]


def alignn_conv(g_pair, r_params, angle_params):
    """AlignnConv.forward: g_pair = (radius_graph, angle_graph) -> (v, e)."""
    g, h = g_pair
    v = schnet_conv(g, r_params)
    e = schnet_conv(h, angle_params)
    return v, e


# ---------------- deterministic parameter init ----------------
def _init_linear(key, fan_in, fan_out):
    k1, k2 = jax.random.split(key)
    scale = 1.0 / jnp.sqrt(jnp.float32(fan_in))
    w = jax.random.uniform(k1, (fan_in, fan_out), jnp.float32, -scale, scale)
    b = jax.random.uniform(k2, (1, fan_out), jnp.float32, -scale, scale)
    return w, b


def init_schnet_params(key, radial_feats, hidden_feats, out_feats):
    ks = jax.random.split(key, 4)
    w1, b1 = _init_linear(ks[0], radial_feats, hidden_feats)   # FGN_MLP1
    w2, b2 = _init_linear(ks[1], hidden_feats, out_feats)      # FGN_MLP2
    w3, b3 = _init_linear(ks[2], out_feats, out_feats)         # IB_MLP1
    w4, b4 = _init_linear(ks[3], out_feats, out_feats)         # IB_MLP2
    return (w1, b1, w2, b2, w3, b3, w4, b4)


def make_graph(key, n_nodes, k_nbrs, feats, radial_feats):
    ks = jax.random.split(key, 5)
    return {
        "h": jax.random.normal(ks[0], (n_nodes, feats), jnp.float32),
        "bf": jax.random.normal(ks[1], (n_nodes, k_nbrs, radial_feats), jnp.float32),
        "knn": jax.random.randint(ks[2], (n_nodes, k_nbrs), 0, n_nodes, jnp.int32),
        "h_edge": jax.random.normal(ks[3], (n_nodes, k_nbrs, feats), jnp.float32),
        "cutoff": jax.random.uniform(ks[4], (n_nodes, k_nbrs), jnp.float32),
    }


if __name__ == "__main__":
    # small, in_feats == out_feats (required by the h_src * bf elementwise product)
    feats, radial_feats, hidden_feats = 32, 64, 32

    key = jax.random.PRNGKey(0)
    k_g, k_h, k_pr, k_pa = jax.random.split(key, 4)

    radius_graph = make_graph(k_g, n_nodes=8, k_nbrs=4, feats=feats,
                              radial_feats=radial_feats)
    angle_graph = make_graph(k_h, n_nodes=16, k_nbrs=4, feats=feats,
                             radial_feats=radial_feats)

    r_params = init_schnet_params(k_pr, radial_feats, hidden_feats, feats)
    a_params = init_schnet_params(k_pa, radial_feats, hidden_feats, feats)

    v, e = alignn_conv((radius_graph, angle_graph), r_params, a_params)
    jax.block_until_ready((v, e))
    assert v.shape == (8, feats) and e.shape == (16, feats)
    print("KERNEL_OK")
</pallas_src>

<mosaic_0001>
module attributes {stable_mosaic.version = 11 : i64} {
  func.func @schnet_conv_kernel(%arg0: i32, %arg1: memref<32xi32, #tpu.memory_space<smem>>, %arg2: memref<4x8x128xbf16, #tpu.memory_space<vmem>>, %arg3: memref<4x8x128xf32, #tpu.memory_space<vmem>>, %arg4: memref<8x128xf32, #tpu.memory_space<vmem>>, %arg5: memref<128x128xbf16, #tpu.memory_space<vmem>>, %arg6: memref<1x128xf32, #tpu.memory_space<vmem>>, %arg7: memref<128x128xbf16, #tpu.memory_space<vmem>>, %arg8: memref<1x128xf32, #tpu.memory_space<vmem>>, %arg9: memref<128x128xbf16, #tpu.memory_space<vmem>>, %arg10: memref<1x128xf32, #tpu.memory_space<vmem>>, %arg11: memref<128x128xbf16, #tpu.memory_space<vmem>>, %arg12: memref<1x128xf32, #tpu.memory_space<vmem>>, %arg13: memref<8x128xf32, #tpu.memory_space<vmem>>, %arg14: memref<4x8x128xf32, #tpu.memory_space<vmem>>, %arg15: memref<8x128xf32, #tpu.memory_space<vmem>>) attributes {dimension_semantics = [#tpu.dimension_semantics<parallel>], iteration_bounds = array<i64: 1>, scalar_prefetch = 1 : i64, scratch_operands = 2 : i64, tpu.core_type = #tpu.core_type<tc>, window_params = [{transform_indices = @transform_0, window_bounds = array<i64: 4, 8, 128>}, {transform_indices = @transform_1, window_bounds = array<i64: 4, 8, 128>}, {pipeline_mode = #tpu.pipeline_mode<synchronous>, transform_indices = @transform_2, window_bounds = array<i64: 8, 128>}, {pipeline_mode = #tpu.pipeline_mode<synchronous>, transform_indices = @transform_3, window_bounds = array<i64: 128, 128>}, {pipeline_mode = #tpu.pipeline_mode<synchronous>, transform_indices = @transform_4, window_bounds = array<i64: 1, 128>}, {pipeline_mode = #tpu.pipeline_mode<synchronous>, transform_indices = @transform_5, window_bounds = array<i64: 128, 128>}, {pipeline_mode = #tpu.pipeline_mode<synchronous>, transform_indices = @transform_6, window_bounds = array<i64: 1, 128>}, {pipeline_mode = #tpu.pipeline_mode<synchronous>, transform_indices = @transform_7, window_bounds = array<i64: 128, 128>}, {pipeline_mode = #tpu.pipeline_mode<synchronous>, transform_indices = @transform_8, window_bounds = array<i64: 1, 128>}, {pipeline_mode = #tpu.pipeline_mode<synchronous>, transform_indices = @transform_9, window_bounds = array<i64: 128, 128>}, {pipeline_mode = #tpu.pipeline_mode<synchronous>, transform_indices = @transform_10, window_bounds = array<i64: 1, 128>}, {transform_indices = @transform_11, window_bounds = array<i64: 8, 128>}]} {
    %c0 = arith.constant 0 : index
    %c0_0 = arith.constant 0 : index
    %c0_1 = arith.constant 0 : index
    %0 = vector.load %arg2[%c0, %c0_0, %c0_1] : memref<4x8x128xbf16, #tpu.memory_space<vmem>>, vector<1x8x128xbf16>
    %1 = vector.shape_cast %0 : vector<1x8x128xbf16> to vector<8x128xbf16>
    %c0_2 = arith.constant 0 : index
    %c0_3 = arith.constant 0 : index
    %2 = vector.load %arg5[%c0_2, %c0_3] : memref<128x128xbf16, #tpu.memory_space<vmem>>, vector<128x128xbf16>
    %cst = arith.constant dense<0.000000e+00> : vector<8x128xf32>
    %3 = tpu.matmul %1, %2, %cst {dimension_numbers = #tpu.dot_dimension_numbers<[1], [0], [0], [1], [0, 0, 1, 1], [], []>} : vector<8x128xbf16>, vector<128x128xbf16>, vector<8x128xf32> -> vector<8x128xf32>
    %c0_4 = arith.constant 0 : index
    %c0_5 = arith.constant 0 : index
    %4 = vector.load %arg6[%c0_4, %c0_5] : memref<1x128xf32, #tpu.memory_space<vmem>>, vector<1x128xf32>
    %5 = vector.broadcast %4 : vector<1x128xf32> to vector<8x128xf32>
    %6 = arith.addf %3, %5 : vector<8x128xf32>
    %7 = arith.negf %6 : vector<8x128xf32>
    %8 = math.exp %7 : vector<8x128xf32>
    %cst_6 = arith.constant 1.000000e+00 : f32
    %9 = vector.broadcast %cst_6 : f32 to vector<8x128xf32>
    %10 = arith.addf %9, %8 : vector<8x128xf32>
    %11 = arith.divf %9, %10 : vector<8x128xf32>
    %12 = arith.mulf %6, %11 : vector<8x128xf32>
    %13 = arith.truncf %12 : vector<8x128xf32> to vector<8x128xbf16>
    %c0_7 = arith.constant 0 : index
    %c0_8 = arith.constant 0 : index
    %14 = vector.load %arg7[%c0_7, %c0_8] : memref<128x128xbf16, #tpu.memory_space<vmem>>, vector<128x128xbf16>
    %cst_9 = arith.constant dense<0.000000e+00> : vector<8x128xf32>
    %15 = tpu.matmul %13, %14, %cst_9 {dimension_numbers = #tpu.dot_dimension_numbers<[1], [0], [0], [1], [0, 0, 1, 1], [], []>} : vector<8x128xbf16>, vector<128x128xbf16>, vector<8x128xf32> -> vector<8x128xf32>
    %c0_10 = arith.constant 0 : index
    %c0_11 = arith.constant 0 : index
    %16 = vector.load %arg8[%c0_10, %c0_11] : memref<1x128xf32, #tpu.memory_space<vmem>>, vector<1x128xf32>
    %17 = vector.broadcast %16 : vector<1x128xf32> to vector<8x128xf32>
    %18 = arith.addf %15, %17 : vector<8x128xf32>
    %19 = arith.negf %18 : vector<8x128xf32>
    %20 = math.exp %19 : vector<8x128xf32>
    %cst_12 = arith.constant 1.000000e+00 : f32
    %21 = vector.broadcast %cst_12 : f32 to vector<8x128xf32>
    %22 = arith.addf %21, %20 : vector<8x128xf32>
    %23 = arith.divf %21, %22 : vector<8x128xf32>
    %24 = arith.mulf %18, %23 : vector<8x128xf32>
    %c0_13 = arith.constant 0 : index
    %c0_14 = arith.constant 0 : index
    %c0_15 = arith.constant 0 : index
    %25 = vector.load %arg3[%c0_13, %c0_14, %c0_15] : memref<4x8x128xf32, #tpu.memory_space<vmem>>, vector<1x8x128xf32>
    %26 = vector.shape_cast %25 : vector<1x8x128xf32> to vector<8x128xf32>
    %27 = arith.mulf %24, %26 : vector<8x128xf32>
    %c0_16 = arith.constant 0 : index
    %c0_17 = arith.constant 0 : index
    %c0_18 = arith.constant 0 : index
    %28 = vector.load %arg14[%c0_16, %c0_17, %c0_18] : memref<4x8x128xf32, #tpu.memory_space<vmem>>, vector<1x8x128xf32>
    %29 = vector.shape_cast %28 : vector<1x8x128xf32> to vector<8x128xf32>
    %30 = vector.shape_cast %27 : vector<8x128xf32> to vector<1x8x128xf32>
    tpu.vector_store %arg14[%c0_16, %c0_17, %c0_18], %30 {strides = array<i32>} : memref<4x8x128xf32, #tpu.memory_space<vmem>>, vector<1x8x128xf32>,
    %c1 = arith.constant 1 : index
    %c0_19 = arith.constant 0 : index
    %c0_20 = arith.constant 0 : index
    %31 = vector.load %arg2[%c1, %c0_19, %c0_20] : memref<4x8x128xbf16, #tpu.memory_space<vmem>>, vector<1x8x128xbf16>
    %32 = vector.shape_cast %31 : vector<1x8x128xbf16> to vector<8x128xbf16>
    %c0_21 = arith.constant 0 : index
    %c0_22 = arith.constant 0 : index
    %33 = vector.load %arg5[%c0_21, %c0_22] : memref<128x128xbf16, #tpu.memory_space<vmem>>, vector<128x128xbf16>
    %cst_23 = arith.constant dense<0.000000e+00> : vector<8x128xf32>
    %34 = tpu.matmul %32, %33, %cst_23 {dimension_numbers = #tpu.dot_dimension_numbers<[1], [0], [0], [1], [0, 0, 1, 1], [], []>} : vector<8x128xbf16>, vector<128x128xbf16>, vector<8x128xf32> -> vector<8x128xf32>
    %c0_24 = arith.constant 0 : index
    %c0_25 = arith.constant 0 : index
    %35 = vector.load %arg6[%c0_24, %c0_25] : memref<1x128xf32, #tpu.memory_space<vmem>>, vector<1x128xf32>
    %36 = vector.broadcast %35 : vector<1x128xf32> to vector<8x128xf32>
    %37 = arith.addf %34, %36 : vector<8x128xf32>
    %38 = arith.negf %37 : vector<8x128xf32>
    %39 = math.exp %38 : vector<8x128xf32>
    %cst_26 = arith.constant 1.000000e+00 : f32
    %40 = vector.broadcast %cst_26 : f32 to vector<8x128xf32>
    %41 = arith.addf %40, %39 : vector<8x128xf32>
    %42 = arith.divf %40, %41 : vector<8x128xf32>
    %43 = arith.mulf %37, %42 : vector<8x128xf32>
    %44 = arith.truncf %43 : vector<8x128xf32> to vector<8x128xbf16>
    %c0_27 = arith.constant 0 : index
    %c0_28 = arith.constant 0 : index
    %45 = vector.load %arg7[%c0_27, %c0_28] : memref<128x128xbf16, #tpu.memory_space<vmem>>, vector<128x128xbf16>
    %cst_29 = arith.constant dense<0.000000e+00> : vector<8x128xf32>
    %46 = tpu.matmul %44, %45, %cst_29 {dimension_numbers = #tpu.dot_dimension_numbers<[1], [0], [0], [1], [0, 0, 1, 1], [], []>} : vector<8x128xbf16>, vector<128x128xbf16>, vector<8x128xf32> -> vector<8x128xf32>
    %c0_30 = arith.constant 0 : index
    %c0_31 = arith.constant 0 : index
    %47 = vector.load %arg8[%c0_30, %c0_31] : memref<1x128xf32, #tpu.memory_space<vmem>>, vector<1x128xf32>
    %48 = vector.broadcast %47 : vector<1x128xf32> to vector<8x128xf32>
    %49 = arith.addf %46, %48 : vector<8x128xf32>
    %50 = arith.negf %49 : vector<8x128xf32>
    %51 = math.exp %50 : vector<8x128xf32>
    %cst_32 = arith.constant 1.000000e+00 : f32
    %52 = vector.broadcast %cst_32 : f32 to vector<8x128xf32>
    %53 = arith.addf %52, %51 : vector<8x128xf32>
    %54 = arith.divf %52, %53 : vector<8x128xf32>
    %55 = arith.mulf %49, %54 : vector<8x128xf32>
    %c1_33 = arith.constant 1 : index
    %c0_34 = arith.constant 0 : index
    %c0_35 = arith.constant 0 : index
    %56 = vector.load %arg3[%c1_33, %c0_34, %c0_35] : memref<4x8x128xf32, #tpu.memory_space<vmem>>, vector<1x8x128xf32>
    %57 = vector.shape_cast %56 : vector<1x8x128xf32> to vector<8x128xf32>
    %58 = arith.mulf %55, %57 : vector<8x128xf32>
    %c1_36 = arith.constant 1 : index
    %c0_37 = arith.constant 0 : index
    %c0_38 = arith.constant 0 : index
    %59 = vector.load %arg14[%c1_36, %c0_37, %c0_38] : memref<4x8x128xf32, #tpu.memory_space<vmem>>, vector<1x8x128xf32>
    %60 = vector.shape_cast %59 : vector<1x8x128xf32> to vector<8x128xf32>
    %61 = vector.shape_cast %58 : vector<8x128xf32> to vector<1x8x128xf32>
    tpu.vector_store %arg14[%c1_36, %c0_37, %c0_38], %61 {strides = array<i32>} : memref<4x8x128xf32, #tpu.memory_space<vmem>>, vector<1x8x128xf32>,
    %c2 = arith.constant 2 : index
    %c0_39 = arith.constant 0 : index
    %c0_40 = arith.constant 0 : index
    %62 = vector.load %arg2[%c2, %c0_39, %c0_40] : memref<4x8x128xbf16, #tpu.memory_space<vmem>>, vector<1x8x128xbf16>
    %63 = vector.shape_cast %62 : vector<1x8x128xbf16> to vector<8x128xbf16>
    %c0_41 = arith.constant 0 : index
    %c0_42 = arith.constant 0 : index
    %64 = vector.load %arg5[%c0_41, %c0_42] : memref<128x128xbf16, #tpu.memory_space<vmem>>, vector<128x128xbf16>
    %cst_43 = arith.constant dense<0.000000e+00> : vector<8x128xf32>
    %65 = tpu.matmul %63, %64, %cst_43 {dimension_numbers = #tpu.dot_dimension_numbers<[1], [0], [0], [1], [0, 0, 1, 1], [], []>} : vector<8x128xbf16>, vector<128x128xbf16>, vector<8x128xf32> -> vector<8x128xf32>
    %c0_44 = arith.constant 0 : index
    %c0_45 = arith.constant 0 : index
    %66 = vector.load %arg6[%c0_44, %c0_45] : memref<1x128xf32, #tpu.memory_space<vmem>>, vector<1x128xf32>
    %67 = vector.broadcast %66 : vector<1x128xf32> to vector<8x128xf32>
    %68 = arith.addf %65, %67 : vector<8x128xf32>
    %69 = arith.negf %68 : vector<8x128xf32>
    %70 = math.exp %69 : vector<8x128xf32>
    %cst_46 = arith.constant 1.000000e+00 : f32
    %71 = vector.broadcast %cst_46 : f32 to vector<8x128xf32>
    %72 = arith.addf %71, %70 : vector<8x128xf32>
    %73 = arith.divf %71, %72 : vector<8x128xf32>
    %74 = arith.mulf %68, %73 : vector<8x128xf32>
    %75 = arith.truncf %74 : vector<8x128xf32> to vector<8x128xbf16>
    %c0_47 = arith.constant 0 : index
    %c0_48 = arith.constant 0 : index
    %76 = vector.load %arg7[%c0_47, %c0_48] : memref<128x128xbf16, #tpu.memory_space<vmem>>, vector<128x128xbf16>
    %cst_49 = arith.constant dense<0.000000e+00> : vector<8x128xf32>
    %77 = tpu.matmul %75, %76, %cst_49 {dimension_numbers = #tpu.dot_dimension_numbers<[1], [0], [0], [1], [0, 0, 1, 1], [], []>} : vector<8x128xbf16>, vector<128x128xbf16>, vector<8x128xf32> -> vector<8x128xf32>
    %c0_50 = arith.constant 0 : index
    %c0_51 = arith.constant 0 : index
    %78 = vector.load %arg8[%c0_50, %c0_51] : memref<1x128xf32, #tpu.memory_space<vmem>>, vector<1x128xf32>
    %79 = vector.broadcast %78 : vector<1x128xf32> to vector<8x128xf32>
    %80 = arith.addf %77, %79 : vector<8x128xf32>
    %81 = arith.negf %80 : vector<8x128xf32>
    %82 = math.exp %81 : vector<8x128xf32>
    %cst_52 = arith.constant 1.000000e+00 : f32
    %83 = vector.broadcast %cst_52 : f32 to vector<8x128xf32>
    %84 = arith.addf %83, %82 : vector<8x128xf32>
    %85 = arith.divf %83, %84 : vector<8x128xf32>
    %86 = arith.mulf %80, %85 : vector<8x128xf32>
    %c2_53 = arith.constant 2 : index
    %c0_54 = arith.constant 0 : index
    %c0_55 = arith.constant 0 : index
    %87 = vector.load %arg3[%c2_53, %c0_54, %c0_55] : memref<4x8x128xf32, #tpu.memory_space<vmem>>, vector<1x8x128xf32>
    %88 = vector.shape_cast %87 : vector<1x8x128xf32> to vector<8x128xf32>
    %89 = arith.mulf %86, %88 : vector<8x128xf32>
    %c2_56 = arith.constant 2 : index
    %c0_57 = arith.constant 0 : index
    %c0_58 = arith.constant 0 : index
    %90 = vector.load %arg14[%c2_56, %c0_57, %c0_58] : memref<4x8x128xf32, #tpu.memory_space<vmem>>, vector<1x8x128xf32>
    %91 = vector.shape_cast %90 : vector<1x8x128xf32> to vector<8x128xf32>
    %92 = vector.shape_cast %89 : vector<8x128xf32> to vector<1x8x128xf32>
    tpu.vector_store %arg14[%c2_56, %c0_57, %c0_58], %92 {strides = array<i32>} : memref<4x8x128xf32, #tpu.memory_space<vmem>>, vector<1x8x128xf32>,
    %c3 = arith.constant 3 : index
    %c0_59 = arith.constant 0 : index
    %c0_60 = arith.constant 0 : index
    %93 = vector.load %arg2[%c3, %c0_59, %c0_60] : memref<4x8x128xbf16, #tpu.memory_space<vmem>>, vector<1x8x128xbf16>
    %94 = vector.shape_cast %93 : vector<1x8x128xbf16> to vector<8x128xbf16>
    %c0_61 = arith.constant 0 : index
    %c0_62 = arith.constant 0 : index
    %95 = vector.load %arg5[%c0_61, %c0_62] : memref<128x128xbf16, #tpu.memory_space<vmem>>, vector<128x128xbf16>
    %cst_63 = arith.constant dense<0.000000e+00> : vector<8x128xf32>
    %96 = tpu.matmul %94, %95, %cst_63 {dimension_numbers = #tpu.dot_dimension_numbers<[1], [0], [0], [1], [0, 0, 1, 1], [], []>} : vector<8x128xbf16>, vector<128x128xbf16>, vector<8x128xf32> -> vector<8x128xf32>
    %c0_64 = arith.constant 0 : index
    %c0_65 = arith.constant 0 : index
    %97 = vector.load %arg6[%c0_64, %c0_65] : memref<1x128xf32, #tpu.memory_space<vmem>>, vector<1x128xf32>
    %98 = vector.broadcast %97 : vector<1x128xf32> to vector<8x128xf32>
    %99 = arith.addf %96, %98 : vector<8x128xf32>
    %100 = arith.negf %99 : vector<8x128xf32>
    %101 = math.exp %100 : vector<8x128xf32>
    %cst_66 = arith.constant 1.000000e+00 : f32
    %102 = vector.broadcast %cst_66 : f32 to vector<8x128xf32>
    %103 = arith.addf %102, %101 : vector<8x128xf32>
    %104 = arith.divf %102, %103 : vector<8x128xf32>
    %105 = arith.mulf %99, %104 : vector<8x128xf32>
    %106 = arith.truncf %105 : vector<8x128xf32> to vector<8x128xbf16>
    %c0_67 = arith.constant 0 : index
    %c0_68 = arith.constant 0 : index
    %107 = vector.load %arg7[%c0_67, %c0_68] : memref<128x128xbf16, #tpu.memory_space<vmem>>, vector<128x128xbf16>
    %cst_69 = arith.constant dense<0.000000e+00> : vector<8x128xf32>
    %108 = tpu.matmul %106, %107, %cst_69 {dimension_numbers = #tpu.dot_dimension_numbers<[1], [0], [0], [1], [0, 0, 1, 1], [], []>} : vector<8x128xbf16>, vector<128x128xbf16>, vector<8x128xf32> -> vector<8x128xf32>
    %c0_70 = arith.constant 0 : index
    %c0_71 = arith.constant 0 : index
    %109 = vector.load %arg8[%c0_70, %c0_71] : memref<1x128xf32, #tpu.memory_space<vmem>>, vector<1x128xf32>
    %110 = vector.broadcast %109 : vector<1x128xf32> to vector<8x128xf32>
    %111 = arith.addf %108, %110 : vector<8x128xf32>
    %112 = arith.negf %111 : vector<8x128xf32>
    %113 = math.exp %112 : vector<8x128xf32>
    %cst_72 = arith.constant 1.000000e+00 : f32
    %114 = vector.broadcast %cst_72 : f32 to vector<8x128xf32>
    %115 = arith.addf %114, %113 : vector<8x128xf32>
    %116 = arith.divf %114, %115 : vector<8x128xf32>
    %117 = arith.mulf %111, %116 : vector<8x128xf32>
    %c3_73 = arith.constant 3 : index
    %c0_74 = arith.constant 0 : index
    %c0_75 = arith.constant 0 : index
    %118 = vector.load %arg3[%c3_73, %c0_74, %c0_75] : memref<4x8x128xf32, #tpu.memory_space<vmem>>, vector<1x8x128xf32>
    %119 = vector.shape_cast %118 : vector<1x8x128xf32> to vector<8x128xf32>
    %120 = arith.mulf %117, %119 : vector<8x128xf32>
    %c3_76 = arith.constant 3 : index
    %c0_77 = arith.constant 0 : index
    %c0_78 = arith.constant 0 : index
    %121 = vector.load %arg14[%c3_76, %c0_77, %c0_78] : memref<4x8x128xf32, #tpu.memory_space<vmem>>, vector<1x8x128xf32>
    %122 = vector.shape_cast %121 : vector<1x8x128xf32> to vector<8x128xf32>
    %123 = vector.shape_cast %120 : vector<8x128xf32> to vector<1x8x128xf32>
    tpu.vector_store %arg14[%c3_76, %c0_77, %c0_78], %123 {strides = array<i32>} : memref<4x8x128xf32, #tpu.memory_space<vmem>>, vector<1x8x128xf32>,
    %c8_i32 = arith.constant 8 : i32
    %124 = arith.muli %arg0, %c8_i32 : i32
    %c0_i32 = arith.constant 0 : i32
    %c8_i32_79 = arith.constant 8 : i32
    %125 = arith.muli %c0_i32, %c8_i32_79 : i32
    %126 = tpu.assume_multiple %125, 8 : i32
    %c0_i32_80 = arith.constant 0 : i32
    %127 = arith.addi %126, %c0_i32_80 : i32
    %c0_i32_81 = arith.constant 0 : i32
    %128 = arith.addi %c0_i32_81, %124 : i32
    %129 = arith.addi %128, %127 : i32
    %130 = arith.index_cast %129 : i32 to index
    %131 = memref.load %arg1[%130] : memref<32xi32, #tpu.memory_space<smem>>
    %132 = arith.index_cast %131 : i32 to index
    %c0_82 = arith.constant 0 : index
    %133 = vector.load %arg4[%132, %c0_82] : memref<8x128xf32, #tpu.memory_space<vmem>>, vector<1x128xf32>
    %c0_83 = arith.constant 0 : index
    %134 = arith.index_cast %127 : i32 to index
    %c0_84 = arith.constant 0 : index
    %135 = vector.load %arg14[%c0_83, %134, %c0_84] : memref<4x8x128xf32, #tpu.memory_space<vmem>>, vector<1x1x128xf32>
    %136 = vector.shape_cast %135 : vector<1x1x128xf32> to vector<1x128xf32>
    %137 = arith.mulf %133, %136 : vector<1x128xf32>
    %c8_i32_85 = arith.constant 8 : i32
    %138 = arith.addi %c8_i32_85, %124 : i32
    %139 = arith.addi %138, %127 : i32
    %140 = arith.index_cast %139 : i32 to index
    %141 = memref.load %arg1[%140] : memref<32xi32, #tpu.memory_space<smem>>
    %142 = arith.index_cast %141 : i32 to index
    %c0_86 = arith.constant 0 : index
    %143 = vector.load %arg4[%142, %c0_86] : memref<8x128xf32, #tpu.memory_space<vmem>>, vector<1x128xf32>
    %c1_87 = arith.constant 1 : index
    %144 = arith.index_cast %127 : i32 to index
    %c0_88 = arith.constant 0 : index
    %145 = vector.load %arg14[%c1_87, %144, %c0_88] : memref<4x8x128xf32, #tpu.memory_space<vmem>>, vector<1x1x128xf32>
    %146 = vector.shape_cast %145 : vector<1x1x128xf32> to vector<1x128xf32>
    %147 = arith.mulf %143, %146 : vector<1x128xf32>
    %148 = arith.addf %137, %147 : vector<1x128xf32>
    %c16_i32 = arith.constant 16 : i32
    %149 = arith.addi %c16_i32, %124 : i32
    %150 = arith.addi %149, %127 : i32
    %151 = arith.index_cast %150 : i32 to index
    %152 = memref.load %arg1[%151] : memref<32xi32, #tpu.memory_space<smem>>
    %153 = arith.index_cast %152 : i32 to index
    %c0_89 = arith.constant 0 : index
    %154 = vector.load %arg4[%153, %c0_89] : memref<8x128xf32, #tpu.memory_space<vmem>>, vector<1x128xf32>
    %c2_90 = arith.constant 2 : index
    %155 = arith.index_cast %127 : i32 to index
    %c0_91 = arith.constant 0 : index
    %156 = vector.load %arg14[%c2_90, %155, %c0_91] : memref<4x8x128xf32, #tpu.memory_space<vmem>>, vector<1x1x128xf32>
    %157 = vector.shape_cast %156 : vector<1x1x128xf32> to vector<1x128xf32>
    %158 = arith.mulf %154, %157 : vector<1x128xf32>
    %159 = arith.addf %148, %158 : vector<1x128xf32>
    %c24_i32 = arith.constant 24 : i32
    %160 = arith.addi %c24_i32, %124 : i32
    %161 = arith.addi %160, %127 : i32
    %162 = arith.index_cast %161 : i32 to index
    %163 = memref.load %arg1[%162] : memref<32xi32, #tpu.memory_space<smem>>
    %164 = arith.index_cast %163 : i32 to index
    %c0_92 = arith.constant 0 : index
    %165 = vector.load %arg4[%164, %c0_92] : memref<8x128xf32, #tpu.memory_space<vmem>>, vector<1x128xf32>
    %c3_93 = arith.constant 3 : index
    %166 = arith.index_cast %127 : i32 to index
    %c0_94 = arith.constant 0 : index
    %167 = vector.load %arg14[%c3_93, %166, %c0_94] : memref<4x8x128xf32, #tpu.memory_space<vmem>>, vector<1x1x128xf32>
    %168 = vector.shape_cast %167 : vector<1x1x128xf32> to vector<1x128xf32>
    %169 = arith.mulf %165, %168 : vector<1x128xf32>
    %170 = arith.addf %159, %169 : vector<1x128xf32>
    %171 = arith.index_cast %127 : i32 to index
    %c0_95 = arith.constant 0 : index
    %172 = vector.load %arg15[%171, %c0_95] : memref<8x128xf32, #tpu.memory_space<vmem>>, vector<1x128xf32>
    tpu.vector_store %arg15[%171, %c0_95], %170 {strides = array<i32>} : memref<8x128xf32, #tpu.memory_space<vmem>>, vector<1x128xf32>,
    %c1_i32 = arith.constant 1 : i32
    %173 = arith.addi %126, %c1_i32 : i32
    %c0_i32_96 = arith.constant 0 : i32
    %174 = arith.addi %c0_i32_96, %124 : i32
    %175 = arith.addi %174, %173 : i32
    %176 = arith.index_cast %175 : i32 to index
    %177 = memref.load %arg1[%176] : memref<32xi32, #tpu.memory_space<smem>>
    %178 = arith.index_cast %177 : i32 to index
    %c0_97 = arith.constant 0 : index
    %179 = vector.load %arg4[%178, %c0_97] : memref<8x128xf32, #tpu.memory_space<vmem>>, vector<1x128xf32>
    %c0_98 = arith.constant 0 : index
    %180 = arith.index_cast %173 : i32 to index
    %c0_99 = arith.constant 0 : index
    %181 = vector.load %arg14[%c0_98, %180, %c0_99] : memref<4x8x128xf32, #tpu.memory_space<vmem>>, vector<1x1x128xf32>
    %182 = vector.shape_cast %181 : vector<1x1x128xf32> to vector<1x128xf32>
    %183 = arith.mulf %179, %182 : vector<1x128xf32>
    %c8_i32_100 = arith.constant 8 : i32
    %184 = arith.addi %c8_i32_100, %124 : i32
    %185 = arith.addi %184, %173 : i32
    %186 = arith.index_cast %185 : i32 to index
    %187 = memref.load %arg1[%186] : memref<32xi32, #tpu.memory_space<smem>>
    %188 = arith.index_cast %187 : i32 to index
    %c0_101 = arith.constant 0 : index
    %189 = vector.load %arg4[%188, %c0_101] : memref<8x128xf32, #tpu.memory_space<vmem>>, vector<1x128xf32>
    %c1_102 = arith.constant 1 : index
    %190 = arith.index_cast %173 : i32 to index
    %c0_103 = arith.constant 0 : index
    %191 = vector.load %arg14[%c1_102, %190, %c0_103] : memref<4x8x128xf32, #tpu.memory_space<vmem>>, vector<1x1x128xf32>
    %192 = vector.shape_cast %191 : vector<1x1x128xf32> to vector<1x128xf32>
    %193 = arith.mulf %189, %192 : vector<1x128xf32>
    %194 = arith.addf %183, %193 : vector<1x128xf32>
    %c16_i32_104 = arith.constant 16 : i32
    %195 = arith.addi %c16_i32_104, %124 : i32
    %196 = arith.addi %195, %173 : i32
    %197 = arith.index_cast %196 : i32 to index
    %198 = memref.load %arg1[%197] : memref<32xi32, #tpu.memory_space<smem>>
    %199 = arith.index_cast %198 : i32 to index
    %c0_105 = arith.constant 0 : index
    %200 = vector.load %arg4[%199, %c0_105] : memref<8x128xf32, #tpu.memory_space<vmem>>, vector<1x128xf32>
    %c2_106 = arith.constant 2 : index
    %201 = arith.index_cast %173 : i32 to index
    %c0_107 = arith.constant 0 : index
    %202 = vector.load %arg14[%c2_106, %201, %c0_107] : memref<4x8x128xf32, #tpu.memory_space<vmem>>, vector<1x1x128xf32>
    %203 = vector.shape_cast %202 : vector<1x1x128xf32> to vector<1x128xf32>
    %204 = arith.mulf %200, %203 : vector<1x128xf32>
    %205 = arith.addf %194, %204 : vector<1x128xf32>
    %c24_i32_108 = arith.constant 24 : i32
    %206 = arith.addi %c24_i32_108, %124 : i32
    %207 = arith.addi %206, %173 : i32
    %208 = arith.index_cast %207 : i32 to index
    %209 = memref.load %arg1[%208] : memref<32xi32, #tpu.memory_space<smem>>
    %210 = arith.index_cast %209 : i32 to index
    %c0_109 = arith.constant 0 : index
    %211 = vector.load %arg4[%210, %c0_109] : memref<8x128xf32, #tpu.memory_space<vmem>>, vector<1x128xf32>
    %c3_110 = arith.constant 3 : index
    %212 = arith.index_cast %173 : i32 to index
    %c0_111 = arith.constant 0 : index
    %213 = vector.load %arg14[%c3_110, %212, %c0_111] : memref<4x8x128xf32, #tpu.memory_space<vmem>>, vector<1x1x128xf32>
    %214 = vector.shape_cast %213 : vector<1x1x128xf32> to vector<1x128xf32>
    %215 = arith.mulf %211, %214 : vector<1x128xf32>
    %216 = arith.addf %205, %215 : vector<1x128xf32>
    %217 = arith.index_cast %173 : i32 to index
    %c0_112 = arith.constant 0 : index
    %218 = vector.load %arg15[%217, %c0_112] : memref<8x128xf32, #tpu.memory_space<vmem>>, vector<1x128xf32>
    tpu.vector_store %arg15[%217, %c0_112], %216 {strides = array<i32>} : memref<8x128xf32, #tpu.memory_space<vmem>>, vector<1x128xf32>,
    %c2_i32 = arith.constant 2 : i32
    %219 = arith.addi %126, %c2_i32 : i32
    %c0_i32_113 = arith.constant 0 : i32
    %220 = arith.addi %c0_i32_113, %124 : i32
    %221 = arith.addi %220, %219 : i32
    %222 = arith.index_cast %221 : i32 to index
    %223 = memref.load %arg1[%222] : memref<32xi32, #tpu.memory_space<smem>>
    %224 = arith.index_cast %223 : i32 to index
    %c0_114 = arith.constant 0 : index
    %225 = vector.load %arg4[%224, %c0_114] : memref<8x128xf32, #tpu.memory_space<vmem>>, vector<1x128xf32>
    %c0_115 = arith.constant 0 : index
    %226 = arith.index_cast %219 : i32 to index
    %c0_116 = arith.constant 0 : index
    %227 = vector.load %arg14[%c0_115, %226, %c0_116] : memref<4x8x128xf32, #tpu.memory_space<vmem>>, vector<1x1x128xf32>
    %228 = vector.shape_cast %227 : vector<1x1x128xf32> to vector<1x128xf32>
    %229 = arith.mulf %225, %228 : vector<1x128xf32>
    %c8_i32_117 = arith.constant 8 : i32
    %230 = arith.addi %c8_i32_117, %124 : i32
    %231 = arith.addi %230, %219 : i32
    %232 = arith.index_cast %231 : i32 to index
    %233 = memref.load %arg1[%232] : memref<32xi32, #tpu.memory_space<smem>>
    %234 = arith.index_cast %233 : i32 to index
    %c0_118 = arith.constant 0 : index
    %235 = vector.load %arg4[%234, %c0_118] : memref<8x128xf32, #tpu.memory_space<vmem>>, vector<1x128xf32>
    %c1_119 = arith.constant 1 : index
    %236 = arith.index_cast %219 : i32 to index
    %c0_120 = arith.constant 0 : index
    %237 = vector.load %arg14[%c1_119, %236, %c0_120] : memref<4x8x128xf32, #tpu.memory_space<vmem>>, vector<1x1x128xf32>
    %238 = vector.shape_cast %237 : vector<1x1x128xf32> to vector<1x128xf32>
    %239 = arith.mulf %235, %238 : vector<1x128xf32>
    %240 = arith.addf %229, %239 : vector<1x128xf32>
    %c16_i32_121 = arith.constant 16 : i32
    %241 = arith.addi %c16_i32_121, %124 : i32
    %242 = arith.addi %241, %219 : i32
    %243 = arith.index_cast %242 : i32 to index
    %244 = memref.load %arg1[%243] : memref<32xi32, #tpu.memory_space<smem>>
    %245 = arith.index_cast %244 : i32 to index
    %c0_122 = arith.constant 0 : index
    %246 = vector.load %arg4[%245, %c0_122] : memref<8x128xf32, #tpu.memory_space<vmem>>, vector<1x128xf32>
    %c2_123 = arith.constant 2 : index
    %247 = arith.index_cast %219 : i32 to index
    %c0_124 = arith.constant 0 : index
    %248 = vector.load %arg14[%c2_123, %247, %c0_124] : memref<4x8x128xf32, #tpu.memory_space<vmem>>, vector<1x1x128xf32>
    %249 = vector.shape_cast %248 : vector<1x1x128xf32> to vector<1x128xf32>
    %250 = arith.mulf %246, %249 : vector<1x128xf32>
    %251 = arith.addf %240, %250 : vector<1x128xf32>
    %c24_i32_125 = arith.constant 24 : i32
    %252 = arith.addi %c24_i32_125, %124 : i32
    %253 = arith.addi %252, %219 : i32
    %254 = arith.index_cast %253 : i32 to index
    %255 = memref.load %arg1[%254] : memref<32xi32, #tpu.memory_space<smem>>
    %256 = arith.index_cast %255 : i32 to index
    %c0_126 = arith.constant 0 : index
    %257 = vector.load %arg4[%256, %c0_126] : memref<8x128xf32, #tpu.memory_space<vmem>>, vector<1x128xf32>
    %c3_127 = arith.constant 3 : index
    %258 = arith.index_cast %219 : i32 to index
    %c0_128 = arith.constant 0 : index
    %259 = vector.load %arg14[%c3_127, %258, %c0_128] : memref<4x8x128xf32, #tpu.memory_space<vmem>>, vector<1x1x128xf32>
    %260 = vector.shape_cast %259 : vector<1x1x128xf32> to vector<1x128xf32>
    %261 = arith.mulf %257, %260 : vector<1x128xf32>
    %262 = arith.addf %251, %261 : vector<1x128xf32>
    %263 = arith.index_cast %219 : i32 to index
    %c0_129 = arith.constant 0 : index
    %264 = vector.load %arg15[%263, %c0_129] : memref<8x128xf32, #tpu.memory_space<vmem>>, vector<1x128xf32>
    tpu.vector_store %arg15[%263, %c0_129], %262 {strides = array<i32>} : memref<8x128xf32, #tpu.memory_space<vmem>>, vector<1x128xf32>,
    %c3_i32 = arith.constant 3 : i32
    %265 = arith.addi %126, %c3_i32 : i32
    %c0_i32_130 = arith.constant 0 : i32
    %266 = arith.addi %c0_i32_130, %124 : i32
    %267 = arith.addi %266, %265 : i32
    %268 = arith.index_cast %267 : i32 to index
    %269 = memref.load %arg1[%268] : memref<32xi32, #tpu.memory_space<smem>>
    %270 = arith.index_cast %269 : i32 to index
    %c0_131 = arith.constant 0 : index
    %271 = vector.load %arg4[%270, %c0_131] : memref<8x128xf32, #tpu.memory_space<vmem>>, vector<1x128xf32>
    %c0_132 = arith.constant 0 : index
    %272 = arith.index_cast %265 : i32 to index
    %c0_133 = arith.constant 0 : index
    %273 = vector.load %arg14[%c0_132, %272, %c0_133] : memref<4x8x128xf32, #tpu.memory_space<vmem>>, vector<1x1x128xf32>
    %274 = vector.shape_cast %273 : vector<1x1x128xf32> to vector<1x128xf32>
    %275 = arith.mulf %271, %274 : vector<1x128xf32>
    %c8_i32_134 = arith.constant 8 : i32
    %276 = arith.addi %c8_i32_134, %124 : i32
    %277 = arith.addi %276, %265 : i32
    %278 = arith.index_cast %277 : i32 to index
    %279 = memref.load %arg1[%278] : memref<32xi32, #tpu.memory_space<smem>>
    %280 = arith.index_cast %279 : i32 to index
    %c0_135 = arith.constant 0 : index
    %281 = vector.load %arg4[%280, %c0_135] : memref<8x128xf32, #tpu.memory_space<vmem>>, vector<1x128xf32>
    %c1_136 = arith.constant 1 : index
    %282 = arith.index_cast %265 : i32 to index
    %c0_137 = arith.constant 0 : index
    %283 = vector.load %arg14[%c1_136, %282, %c0_137] : memref<4x8x128xf32, #tpu.memory_space<vmem>>, vector<1x1x128xf32>
    %284 = vector.shape_cast %283 : vector<1x1x128xf32> to vector<1x128xf32>
    %285 = arith.mulf %281, %284 : vector<1x128xf32>
    %286 = arith.addf %275, %285 : vector<1x128xf32>
    %c16_i32_138 = arith.constant 16 : i32
    %287 = arith.addi %c16_i32_138, %124 : i32
    %288 = arith.addi %287, %265 : i32
    %289 = arith.index_cast %288 : i32 to index
    %290 = memref.load %arg1[%289] : memref<32xi32, #tpu.memory_space<smem>>
    %291 = arith.index_cast %290 : i32 to index
    %c0_139 = arith.constant 0 : index
    %292 = vector.load %arg4[%291, %c0_139] : memref<8x128xf32, #tpu.memory_space<vmem>>, vector<1x128xf32>
    %c2_140 = arith.constant 2 : index
    %293 = arith.index_cast %265 : i32 to index
    %c0_141 = arith.constant 0 : index
    %294 = vector.load %arg14[%c2_140, %293, %c0_141] : memref<4x8x128xf32, #tpu.memory_space<vmem>>, vector<1x1x128xf32>
    %295 = vector.shape_cast %294 : vector<1x1x128xf32> to vector<1x128xf32>
    %296 = arith.mulf %292, %295 : vector<1x128xf32>
    %297 = arith.addf %286, %296 : vector<1x128xf32>
    %c24_i32_142 = arith.constant 24 : i32
    %298 = arith.addi %c24_i32_142, %124 : i32
    %299 = arith.addi %298, %265 : i32
    %300 = arith.index_cast %299 : i32 to index
    %301 = memref.load %arg1[%300] : memref<32xi32, #tpu.memory_space<smem>>
    %302 = arith.index_cast %301 : i32 to index
    %c0_143 = arith.constant 0 : index
    %303 = vector.load %arg4[%302, %c0_143] : memref<8x128xf32, #tpu.memory_space<vmem>>, vector<1x128xf32>
    %c3_144 = arith.constant 3 : index
    %304 = arith.index_cast %265 : i32 to index
    %c0_145 = arith.constant 0 : index
    %305 = vector.load %arg14[%c3_144, %304, %c0_145] : memref<4x8x128xf32, #tpu.memory_space<vmem>>, vector<1x1x128xf32>
    %306 = vector.shape_cast %305 : vector<1x1x128xf32> to vector<1x128xf32>
    %307 = arith.mulf %303, %306 : vector<1x128xf32>
    %308 = arith.addf %297, %307 : vector<1x128xf32>
    %309 = arith.index_cast %265 : i32 to index
    %c0_146 = arith.constant 0 : index
    %310 = vector.load %arg15[%309, %c0_146] : memref<8x128xf32, #tpu.memory_space<vmem>>, vector<1x128xf32>
    tpu.vector_store %arg15[%309, %c0_146], %308 {strides = array<i32>} : memref<8x128xf32, #tpu.memory_space<vmem>>, vector<1x128xf32>,
    %c4_i32 = arith.constant 4 : i32
    %311 = arith.addi %126, %c4_i32 : i32
    %c0_i32_147 = arith.constant 0 : i32
    %312 = arith.addi %c0_i32_147, %124 : i32
    %313 = arith.addi %312, %311 : i32
    %314 = arith.index_cast %313 : i32 to index
    %315 = memref.load %arg1[%314] : memref<32xi32, #tpu.memory_space<smem>>
    %316 = arith.index_cast %315 : i32 to index
    %c0_148 = arith.constant 0 : index
    %317 = vector.load %arg4[%316, %c0_148] : memref<8x128xf32, #tpu.memory_space<vmem>>, vector<1x128xf32>
    %c0_149 = arith.constant 0 : index
    %318 = arith.index_cast %311 : i32 to index
    %c0_150 = arith.constant 0 : index
    %319 = vector.load %arg14[%c0_149, %318, %c0_150] : memref<4x8x128xf32, #tpu.memory_space<vmem>>, vector<1x1x128xf32>
    %320 = vector.shape_cast %319 : vector<1x1x128xf32> to vector<1x128xf32>
    %321 = arith.mulf %317, %320 : vector<1x128xf32>
    %c8_i32_151 = arith.constant 8 : i32
    %322 = arith.addi %c8_i32_151, %124 : i32
    %323 = arith.addi %322, %311 : i32
    %324 = arith.index_cast %323 : i32 to index
    %325 = memref.load %arg1[%324] : memref<32xi32, #tpu.memory_space<smem>>
    %326 = arith.index_cast %325 : i32 to index
    %c0_152 = arith.constant 0 : index
    %327 = vector.load %arg4[%326, %c0_152] : memref<8x128xf32, #tpu.memory_space<vmem>>, vector<1x128xf32>
    %c1_153 = arith.constant 1 : index
    %328 = arith.index_cast %311 : i32 to index
    %c0_154 = arith.constant 0 : index
    %329 = vector.load %arg14[%c1_153, %328, %c0_154] : memref<4x8x128xf32, #tpu.memory_space<vmem>>, vector<1x1x128xf32>
    %330 = vector.shape_cast %329 : vector<1x1x128xf32> to vector<1x128xf32>
    %331 = arith.mulf %327, %330 : vector<1x128xf32>
    %332 = arith.addf %321, %331 : vector<1x128xf32>
    %c16_i32_155 = arith.constant 16 : i32
    %333 = arith.addi %c16_i32_155, %124 : i32
    %334 = arith.addi %333, %311 : i32
    %335 = arith.index_cast %334 : i32 to index
    %336 = memref.load %arg1[%335] : memref<32xi32, #tpu.memory_space<smem>>
    %337 = arith.index_cast %336 : i32 to index
    %c0_156 = arith.constant 0 : index
    %338 = vector.load %arg4[%337, %c0_156] : memref<8x128xf32, #tpu.memory_space<vmem>>, vector<1x128xf32>
    %c2_157 = arith.constant 2 : index
    %339 = arith.index_cast %311 : i32 to index
    %c0_158 = arith.constant 0 : index
    %340 = vector.load %arg14[%c2_157, %339, %c0_158] : memref<4x8x128xf32, #tpu.memory_space<vmem>>, vector<1x1x128xf32>
    %341 = vector.shape_cast %340 : vector<1x1x128xf32> to vector<1x128xf32>
    %342 = arith.mulf %338, %341 : vector<1x128xf32>
    %343 = arith.addf %332, %342 : vector<1x128xf32>
    %c24_i32_159 = arith.constant 24 : i32
    %344 = arith.addi %c24_i32_159, %124 : i32
    %345 = arith.addi %344, %311 : i32
    %346 = arith.index_cast %345 : i32 to index
    %347 = memref.load %arg1[%346] : memref<32xi32, #tpu.memory_space<smem>>
    %348 = arith.index_cast %347 : i32 to index
    %c0_160 = arith.constant 0 : index
    %349 = vector.load %arg4[%348, %c0_160] : memref<8x128xf32, #tpu.memory_space<vmem>>, vector<1x128xf32>
    %c3_161 = arith.constant 3 : index
    %350 = arith.index_cast %311 : i32 to index
    %c0_162 = arith.constant 0 : index
    %351 = vector.load %arg14[%c3_161, %350, %c0_162] : memref<4x8x128xf32, #tpu.memory_space<vmem>>, vector<1x1x128xf32>
    %352 = vector.shape_cast %351 : vector<1x1x128xf32> to vector<1x128xf32>
    %353 = arith.mulf %349, %352 : vector<1x128xf32>
    %354 = arith.addf %343, %353 : vector<1x128xf32>
    %355 = arith.index_cast %311 : i32 to index
    %c0_163 = arith.constant 0 : index
    %356 = vector.load %arg15[%355, %c0_163] : memref<8x128xf32, #tpu.memory_space<vmem>>, vector<1x128xf32>
    tpu.vector_store %arg15[%355, %c0_163], %354 {strides = array<i32>} : memref<8x128xf32, #tpu.memory_space<vmem>>, vector<1x128xf32>,
    %c5_i32 = arith.constant 5 : i32
    %357 = arith.addi %126, %c5_i32 : i32
    %c0_i32_164 = arith.constant 0 : i32
    %358 = arith.addi %c0_i32_164, %124 : i32
    %359 = arith.addi %358, %357 : i32
    %360 = arith.index_cast %359 : i32 to index
    %361 = memref.load %arg1[%360] : memref<32xi32, #tpu.memory_space<smem>>
    %362 = arith.index_cast %361 : i32 to index
    %c0_165 = arith.constant 0 : index
    %363 = vector.load %arg4[%362, %c0_165] : memref<8x128xf32, #tpu.memory_space<vmem>>, vector<1x128xf32>
    %c0_166 = arith.constant 0 : index
    %364 = arith.index_cast %357 : i32 to index
    %c0_167 = arith.constant 0 : index
    %365 = vector.load %arg14[%c0_166, %364, %c0_167] : memref<4x8x128xf32, #tpu.memory_space<vmem>>, vector<1x1x128xf32>
    %366 = vector.shape_cast %365 : vector<1x1x128xf32> to vector<1x128xf32>
    %367 = arith.mulf %363, %366 : vector<1x128xf32>
    %c8_i32_168 = arith.constant 8 : i32
    %368 = arith.addi %c8_i32_168, %124 : i32
    %369 = arith.addi %368, %357 : i32
    %370 = arith.index_cast %369 : i32 to index
    %371 = memref.load %arg1[%370] : memref<32xi32, #tpu.memory_space<smem>>
    %372 = arith.index_cast %371 : i32 to index
    %c0_169 = arith.constant 0 : index
    %373 = vector.load %arg4[%372, %c0_169] : memref<8x128xf32, #tpu.memory_space<vmem>>, vector<1x128xf32>
    %c1_170 = arith.constant 1 : index
    %374 = arith.index_cast %357 : i32 to index
    %c0_171 = arith.constant 0 : index
    %375 = vector.load %arg14[%c1_170, %374, %c0_171] : memref<4x8x128xf32, #tpu.memory_space<vmem>>, vector<1x1x128xf32>
    %376 = vector.shape_cast %375 : vector<1x1x128xf32> to vector<1x128xf32>
    %377 = arith.mulf %373, %376 : vector<1x128xf32>
    %378 = arith.addf %367, %377 : vector<1x128xf32>
    %c16_i32_172 = arith.constant 16 : i32
    %379 = arith.addi %c16_i32_172, %124 : i32
    %380 = arith.addi %379, %357 : i32
    %381 = arith.index_cast %380 : i32 to index
    %382 = memref.load %arg1[%381] : memref<32xi32, #tpu.memory_space<smem>>
    %383 = arith.index_cast %382 : i32 to index
    %c0_173 = arith.constant 0 : index
    %384 = vector.load %arg4[%383, %c0_173] : memref<8x128xf32, #tpu.memory_space<vmem>>, vector<1x128xf32>
    %c2_174 = arith.constant 2 : index
    %385 = arith.index_cast %357 : i32 to index
    %c0_175 = arith.constant 0 : index
    %386 = vector.load %arg14[%c2_174, %385, %c0_175] : memref<4x8x128xf32, #tpu.memory_space<vmem>>, vector<1x1x128xf32>
    %387 = vector.shape_cast %386 : vector<1x1x128xf32> to vector<1x128xf32>
    %388 = arith.mulf %384, %387 : vector<1x128xf32>
    %389 = arith.addf %378, %388 : vector<1x128xf32>
    %c24_i32_176 = arith.constant 24 : i32
    %390 = arith.addi %c24_i32_176, %124 : i32
    %391 = arith.addi %390, %357 : i32
    %392 = arith.index_cast %391 : i32 to index
    %393 = memref.load %arg1[%392] : memref<32xi32, #tpu.memory_space<smem>>
    %394 = arith.index_cast %393 : i32 to index
    %c0_177 = arith.constant 0 : index
    %395 = vector.load %arg4[%394, %c0_177] : memref<8x128xf32, #tpu.memory_space<vmem>>, vector<1x128xf32>
    %c3_178 = arith.constant 3 : index
    %396 = arith.index_cast %357 : i32 to index
    %c0_179 = arith.constant 0 : index
    %397 = vector.load %arg14[%c3_178, %396, %c0_179] : memref<4x8x128xf32, #tpu.memory_space<vmem>>, vector<1x1x128xf32>
    %398 = vector.shape_cast %397 : vector<1x1x128xf32> to vector<1x128xf32>
    %399 = arith.mulf %395, %398 : vector<1x128xf32>
    %400 = arith.addf %389, %399 : vector<1x128xf32>
    %401 = arith.index_cast %357 : i32 to index
    %c0_180 = arith.constant 0 : index
    %402 = vector.load %arg15[%401, %c0_180] : memref<8x128xf32, #tpu.memory_space<vmem>>, vector<1x128xf32>
    tpu.vector_store %arg15[%401, %c0_180], %400 {strides = array<i32>} : memref<8x128xf32, #tpu.memory_space<vmem>>, vector<1x128xf32>,
    %c6_i32 = arith.constant 6 : i32
    %403 = arith.addi %126, %c6_i32 : i32
    %c0_i32_181 = arith.constant 0 : i32
    %404 = arith.addi %c0_i32_181, %124 : i32
    %405 = arith.addi %404, %403 : i32
    %406 = arith.index_cast %405 : i32 to index
    %407 = memref.load %arg1[%406] : memref<32xi32, #tpu.memory_space<smem>>
    %408 = arith.index_cast %407 : i32 to index
    %c0_182 = arith.constant 0 : index
    %409 = vector.load %arg4[%408, %c0_182] : memref<8x128xf32, #tpu.memory_space<vmem>>, vector<1x128xf32>
    %c0_183 = arith.constant 0 : index
    %410 = arith.index_cast %403 : i32 to index
    %c0_184 = arith.constant 0 : index
    %411 = vector.load %arg14[%c0_183, %410, %c0_184] : memref<4x8x128xf32, #tpu.memory_space<vmem>>, vector<1x1x128xf32>
    %412 = vector.shape_cast %411 : vector<1x1x128xf32> to vector<1x128xf32>
    %413 = arith.mulf %409, %412 : vector<1x128xf32>
    %c8_i32_185 = arith.constant 8 : i32
    %414 = arith.addi %c8_i32_185, %124 : i32
    %415 = arith.addi %414, %403 : i32
    %416 = arith.index_cast %415 : i32 to index
    %417 = memref.load %arg1[%416] : memref<32xi32, #tpu.memory_space<smem>>
    %418 = arith.index_cast %417 : i32 to index
    %c0_186 = arith.constant 0 : index
    %419 = vector.load %arg4[%418, %c0_186] : memref<8x128xf32, #tpu.memory_space<vmem>>, vector<1x128xf32>
    %c1_187 = arith.constant 1 : index
    %420 = arith.index_cast %403 : i32 to index
    %c0_188 = arith.constant 0 : index
    %421 = vector.load %arg14[%c1_187, %420, %c0_188] : memref<4x8x128xf32, #tpu.memory_space<vmem>>, vector<1x1x128xf32>
    %422 = vector.shape_cast %421 : vector<1x1x128xf32> to vector<1x128xf32>
    %423 = arith.mulf %419, %422 : vector<1x128xf32>
    %424 = arith.addf %413, %423 : vector<1x128xf32>
    %c16_i32_189 = arith.constant 16 : i32
    %425 = arith.addi %c16_i32_189, %124 : i32
    %426 = arith.addi %425, %403 : i32
    %427 = arith.index_cast %426 : i32 to index
    %428 = memref.load %arg1[%427] : memref<32xi32, #tpu.memory_space<smem>>
    %429 = arith.index_cast %428 : i32 to index
    %c0_190 = arith.constant 0 : index
    %430 = vector.load %arg4[%429, %c0_190] : memref<8x128xf32, #tpu.memory_space<vmem>>, vector<1x128xf32>
    %c2_191 = arith.constant 2 : index
    %431 = arith.index_cast %403 : i32 to index
    %c0_192 = arith.constant 0 : index
    %432 = vector.load %arg14[%c2_191, %431, %c0_192] : memref<4x8x128xf32, #tpu.memory_space<vmem>>, vector<1x1x128xf32>
    %433 = vector.shape_cast %432 : vector<1x1x128xf32> to vector<1x128xf32>
    %434 = arith.mulf %430, %433 : vector<1x128xf32>
    %435 = arith.addf %424, %434 : vector<1x128xf32>
    %c24_i32_193 = arith.constant 24 : i32
    %436 = arith.addi %c24_i32_193, %124 : i32
    %437 = arith.addi %436, %403 : i32
    %438 = arith.index_cast %437 : i32 to index
    %439 = memref.load %arg1[%438] : memref<32xi32, #tpu.memory_space<smem>>
    %440 = arith.index_cast %439 : i32 to index
    %c0_194 = arith.constant 0 : index
    %441 = vector.load %arg4[%440, %c0_194] : memref<8x128xf32, #tpu.memory_space<vmem>>, vector<1x128xf32>
    %c3_195 = arith.constant 3 : index
    %442 = arith.index_cast %403 : i32 to index
    %c0_196 = arith.constant 0 : index
    %443 = vector.load %arg14[%c3_195, %442, %c0_196] : memref<4x8x128xf32, #tpu.memory_space<vmem>>, vector<1x1x128xf32>
    %444 = vector.shape_cast %443 : vector<1x1x128xf32> to vector<1x128xf32>
    %445 = arith.mulf %441, %444 : vector<1x128xf32>
    %446 = arith.addf %435, %445 : vector<1x128xf32>
    %447 = arith.index_cast %403 : i32 to index
    %c0_197 = arith.constant 0 : index
    %448 = vector.load %arg15[%447, %c0_197] : memref<8x128xf32, #tpu.memory_space<vmem>>, vector<1x128xf32>
    tpu.vector_store %arg15[%447, %c0_197], %446 {strides = array<i32>} : memref<8x128xf32, #tpu.memory_space<vmem>>, vector<1x128xf32>,
    %c7_i32 = arith.constant 7 : i32
    %449 = arith.addi %126, %c7_i32 : i32
    %c0_i32_198 = arith.constant 0 : i32
    %450 = arith.addi %c0_i32_198, %124 : i32
    %451 = arith.addi %450, %449 : i32
    %452 = arith.index_cast %451 : i32 to index
    %453 = memref.load %arg1[%452] : memref<32xi32, #tpu.memory_space<smem>>
    %454 = arith.index_cast %453 : i32 to index
    %c0_199 = arith.constant 0 : index
    %455 = vector.load %arg4[%454, %c0_199] : memref<8x128xf32, #tpu.memory_space<vmem>>, vector<1x128xf32>
    %c0_200 = arith.constant 0 : index
    %456 = arith.index_cast %449 : i32 to index
    %c0_201 = arith.constant 0 : index
    %457 = vector.load %arg14[%c0_200, %456, %c0_201] : memref<4x8x128xf32, #tpu.memory_space<vmem>>, vector<1x1x128xf32>
    %458 = vector.shape_cast %457 : vector<1x1x128xf32> to vector<1x128xf32>
    %459 = arith.mulf %455, %458 : vector<1x128xf32>
    %c8_i32_202 = arith.constant 8 : i32
    %460 = arith.addi %c8_i32_202, %124 : i32
    %461 = arith.addi %460, %449 : i32
    %462 = arith.index_cast %461 : i32 to index
    %463 = memref.load %arg1[%462] : memref<32xi32, #tpu.memory_space<smem>>
    %464 = arith.index_cast %463 : i32 to index
    %c0_203 = arith.constant 0 : index
    %465 = vector.load %arg4[%464, %c0_203] : memref<8x128xf32, #tpu.memory_space<vmem>>, vector<1x128xf32>
    %c1_204 = arith.constant 1 : index
    %466 = arith.index_cast %449 : i32 to index
    %c0_205 = arith.constant 0 : index
    %467 = vector.load %arg14[%c1_204, %466, %c0_205] : memref<4x8x128xf32, #tpu.memory_space<vmem>>, vector<1x1x128xf32>
    %468 = vector.shape_cast %467 : vector<1x1x128xf32> to vector<1x128xf32>
    %469 = arith.mulf %465, %468 : vector<1x128xf32>
    %470 = arith.addf %459, %469 : vector<1x128xf32>
    %c16_i32_206 = arith.constant 16 : i32
    %471 = arith.addi %c16_i32_206, %124 : i32
    %472 = arith.addi %471, %449 : i32
    %473 = arith.index_cast %472 : i32 to index
    %474 = memref.load %arg1[%473] : memref<32xi32, #tpu.memory_space<smem>>
    %475 = arith.index_cast %474 : i32 to index
    %c0_207 = arith.constant 0 : index
    %476 = vector.load %arg4[%475, %c0_207] : memref<8x128xf32, #tpu.memory_space<vmem>>, vector<1x128xf32>
    %c2_208 = arith.constant 2 : index
    %477 = arith.index_cast %449 : i32 to index
    %c0_209 = arith.constant 0 : index
    %478 = vector.load %arg14[%c2_208, %477, %c0_209] : memref<4x8x128xf32, #tpu.memory_space<vmem>>, vector<1x1x128xf32>
    %479 = vector.shape_cast %478 : vector<1x1x128xf32> to vector<1x128xf32>
    %480 = arith.mulf %476, %479 : vector<1x128xf32>
    %481 = arith.addf %470, %480 : vector<1x128xf32>
    %c24_i32_210 = arith.constant 24 : i32
    %482 = arith.addi %c24_i32_210, %124 : i32
    %483 = arith.addi %482, %449 : i32
    %484 = arith.index_cast %483 : i32 to index
    %485 = memref.load %arg1[%484] : memref<32xi32, #tpu.memory_space<smem>>
    %486 = arith.index_cast %485 : i32 to index
    %c0_211 = arith.constant 0 : index
    %487 = vector.load %arg4[%486, %c0_211] : memref<8x128xf32, #tpu.memory_space<vmem>>, vector<1x128xf32>
    %c3_212 = arith.constant 3 : index
    %488 = arith.index_cast %449 : i32 to index
    %c0_213 = arith.constant 0 : index
    %489 = vector.load %arg14[%c3_212, %488, %c0_213] : memref<4x8x128xf32, #tpu.memory_space<vmem>>, vector<1x1x128xf32>
    %490 = vector.shape_cast %489 : vector<1x1x128xf32> to vector<1x128xf32>
    %491 = arith.mulf %487, %490 : vector<1x128xf32>
    %492 = arith.addf %481, %491 : vector<1x128xf32>
    %493 = arith.index_cast %449 : i32 to index
    %c0_214 = arith.constant 0 : index
    %494 = vector.load %arg15[%493, %c0_214] : memref<8x128xf32, #tpu.memory_space<vmem>>, vector<1x128xf32>
    tpu.vector_store %arg15[%493, %c0_214], %492 {strides = array<i32>} : memref<8x128xf32, #tpu.memory_space<vmem>>, vector<1x128xf32>,
    %c1_i32_215 = arith.constant 1 : i32
    %c0_216 = arith.constant 0 : index
    %c0_217 = arith.constant 0 : index
    %495 = vector.load %arg15[%c0_216, %c0_217] : memref<8x128xf32, #tpu.memory_space<vmem>>, vector<8x128xf32>
    %496 = arith.truncf %495 : vector<8x128xf32> to vector<8x128xbf16>
    %c0_218 = arith.constant 0 : index
    %c0_219 = arith.constant 0 : index
    %497 = vector.load %arg9[%c0_218, %c0_219] : memref<128x128xbf16, #tpu.memory_space<vmem>>, vector<128x128xbf16>
    %cst_220 = arith.constant dense<0.000000e+00> : vector<8x128xf32>
    %498 = tpu.matmul %496, %497, %cst_220 {dimension_numbers = #tpu.dot_dimension_numbers<[1], [0], [0], [1], [0, 0, 1, 1], [], []>} : vector<8x128xbf16>, vector<128x128xbf16>, vector<8x128xf32> -> vector<8x128xf32>
    %c0_221 = arith.constant 0 : index
    %c0_222 = arith.constant 0 : index
    %499 = vector.load %arg10[%c0_221, %c0_222] : memref<1x128xf32, #tpu.memory_space<vmem>>, vector<1x128xf32>
    %500 = vector.broadcast %499 : vector<1x128xf32> to vector<8x128xf32>
    %501 = arith.addf %498, %500 : vector<8x128xf32>
    %502 = arith.negf %501 : vector<8x128xf32>
    %503 = math.exp %502 : vector<8x128xf32>
    %cst_223 = arith.constant 1.000000e+00 : f32
    %504 = vector.broadcast %cst_223 : f32 to vector<8x128xf32>
    %505 = arith.addf %504, %503 : vector<8x128xf32>
    %506 = arith.divf %504, %505 : vector<8x128xf32>
    %507 = arith.mulf %501, %506 : vector<8x128xf32>
    %508 = arith.truncf %507 : vector<8x128xf32> to vector<8x128xbf16>
    %c0_224 = arith.constant 0 : index
    %c0_225 = arith.constant 0 : index
    %509 = vector.load %arg11[%c0_224, %c0_225] : memref<128x128xbf16, #tpu.memory_space<vmem>>, vector<128x128xbf16>
    %cst_226 = arith.constant dense<0.000000e+00> : vector<8x128xf32>
    %510 = tpu.matmul %508, %509, %cst_226 {dimension_numbers = #tpu.dot_dimension_numbers<[1], [0], [0], [1], [0, 0, 1, 1], [], []>} : vector<8x128xbf16>, vector<128x128xbf16>, vector<8x128xf32> -> vector<8x128xf32>
    %c0_227 = arith.constant 0 : index
    %c0_228 = arith.constant 0 : index
    %511 = vector.load %arg12[%c0_227, %c0_228] : memref<1x128xf32, #tpu.memory_space<vmem>>, vector<1x128xf32>
    %512 = vector.broadcast %511 : vector<1x128xf32> to vector<8x128xf32>
    %513 = arith.addf %510, %512 : vector<8x128xf32>
    %514 = arith.negf %513 : vector<8x128xf32>
    %515 = math.exp %514 : vector<8x128xf32>
    %cst_229 = arith.constant 1.000000e+00 : f32
    %516 = vector.broadcast %cst_229 : f32 to vector<8x128xf32>
    %517 = arith.addf %516, %515 : vector<8x128xf32>
    %518 = arith.divf %516, %517 : vector<8x128xf32>
    %519 = arith.mulf %513, %518 : vector<8x128xf32>
    %c0_230 = arith.constant 0 : index
    %c0_231 = arith.constant 0 : index
    %520 = vector.load %arg13[%c0_230, %c0_231] : memref<8x128xf32, #tpu.memory_space<vmem>>, vector<8x128xf32>
    tpu.vector_store %arg13[%c0_230, %c0_231], %519 {strides = array<i32>} : memref<8x128xf32, #tpu.memory_space<vmem>>, vector<8x128xf32>,
    return
  }
  func.func @transform_0(%arg0: i32, %arg1: memref<32xi32, #tpu.memory_space<smem>>) -> (i32, i32, i32) {
    %c0_i32 = arith.constant 0 : i32
    %c0_i32_0 = arith.constant 0 : i32
    %c0_i32_1 = arith.constant 0 : i32
    return %c0_i32, %arg0, %c0_i32_0 : i32, i32, i32
  }
  func.func @transform_1(%arg0: i32, %arg1: memref<32xi32, #tpu.memory_space<smem>>) -> (i32, i32, i32) {
    %c0_i32 = arith.constant 0 : i32
    %c0_i32_0 = arith.constant 0 : i32
    %c0_i32_1 = arith.constant 0 : i32
    return %c0_i32, %arg0, %c0_i32_0 : i32, i32, i32
  }
  func.func @transform_2(%arg0: i32, %arg1: memref<32xi32, #tpu.memory_space<smem>>) -> (i32, i32) {
    %c0_i32 = arith.constant 0 : i32
    %c0_i32_0 = arith.constant 0 : i32
    %c0_i32_1 = arith.constant 0 : i32
    return %c0_i32, %c0_i32_0 : i32, i32
  }
  func.func @transform_3(%arg0: i32, %arg1: memref<32xi32, #tpu.memory_space<smem>>) -> (i32, i32) {
    %c0_i32 = arith.constant 0 : i32
    %c0_i32_0 = arith.constant 0 : i32
    %c0_i32_1 = arith.constant 0 : i32
    return %c0_i32, %c0_i32_0 : i32, i32
  }
  func.func @transform_4(%arg0: i32, %arg1: memref<32xi32, #tpu.memory_space<smem>>) -> (i32, i32) {
    %c0_i32 = arith.constant 0 : i32
    %c0_i32_0 = arith.constant 0 : i32
    %c0_i32_1 = arith.constant 0 : i32
    return %c0_i32, %c0_i32_0 : i32, i32
  }
  func.func @transform_5(%arg0: i32, %arg1: memref<32xi32, #tpu.memory_space<smem>>) -> (i32, i32) {
    %c0_i32 = arith.constant 0 : i32
    %c0_i32_0 = arith.constant 0 : i32
    %c0_i32_1 = arith.constant 0 : i32
    return %c0_i32, %c0_i32_0 : i32, i32
  }
  func.func @transform_6(%arg0: i32, %arg1: memref<32xi32, #tpu.memory_space<smem>>) -> (i32, i32) {
    %c0_i32 = arith.constant 0 : i32
    %c0_i32_0 = arith.constant 0 : i32
    %c0_i32_1 = arith.constant 0 : i32
    return %c0_i32, %c0_i32_0 : i32, i32
  }
  func.func @transform_7(%arg0: i32, %arg1: memref<32xi32, #tpu.memory_space<smem>>) -> (i32, i32) {
    %c0_i32 = arith.constant 0 : i32
    %c0_i32_0 = arith.constant 0 : i32
    %c0_i32_1 = arith.constant 0 : i32
    return %c0_i32, %c0_i32_0 : i32, i32
  }
  func.func @transform_8(%arg0: i32, %arg1: memref<32xi32, #tpu.memory_space<smem>>) -> (i32, i32) {
    %c0_i32 = arith.constant 0 : i32
    %c0_i32_0 = arith.constant 0 : i32
    %c0_i32_1 = arith.constant 0 : i32
    return %c0_i32, %c0_i32_0 : i32, i32
  }
  func.func @transform_9(%arg0: i32, %arg1: memref<32xi32, #tpu.memory_space<smem>>) -> (i32, i32) {
    %c0_i32 = arith.constant 0 : i32
    %c0_i32_0 = arith.constant 0 : i32
    %c0_i32_1 = arith.constant 0 : i32
    return %c0_i32, %c0_i32_0 : i32, i32
  }
  func.func @transform_10(%arg0: i32, %arg1: memref<32xi32, #tpu.memory_space<smem>>) -> (i32, i32) {
    %c0_i32 = arith.constant 0 : i32
    %c0_i32_0 = arith.constant 0 : i32
    %c0_i32_1 = arith.constant 0 : i32
    return %c0_i32, %c0_i32_0 : i32, i32
  }
  func.func @transform_11(%arg0: i32, %arg1: memref<32xi32, #tpu.memory_space<smem>>) -> (i32, i32) {
    %c0_i32 = arith.constant 0 : i32
    %c0_i32_0 = arith.constant 0 : i32
    return %arg0, %c0_i32 : i32, i32
  }
}

</mosaic_0001>

<bundles_post_ra>
// kernel: tpu_custom_call.1
= control target key start
LH: loop header
LB: loop body
LE: loop exit
PB: predicated region body
PF: predicated region fallthrough
CT: control target
= control target key end

     0   :  { %s3066_s0 = inlined_call_operand.hbm [shape: s32[32], index: 0, kind: input, shape index: {}]   ;;  %s3067_s1 = inlined_call_operand.hbm [shape: bf16[4,8,128], index: 1, kind: input, shape index: {}]   ;;  %s3068_s2 = inlined_call_operand.hbm [shape: f32[4,8,128], index: 2, kind: input, shape index: {}]   ;;  %s3069_s3 = inlined_call_operand.vmem [shape: f32[8,128], index: 3, kind: input, shape index: {}]   ;;  %s3070_s4 = inlined_call_operand.hbm [shape: bf16[128,128], index: 4, kind: input, shape index: {}]   ;;  %s3071_s5 = inlined_call_operand.vmem [shape: f32[1,128], index: 5, kind: input, shape index: {}]   ;;  %s3072_s6 = inlined_call_operand.hbm [shape: bf16[128,128], index: 6, kind: input, shape index: {}]   ;;  %s3073_s7 = inlined_call_operand.vmem [shape: f32[1,128], index: 7, kind: input, shape index: {}]   ;;  %s3074_s8 = inlined_call_operand.hbm [shape: bf16[128,128], index: 8, kind: input, shape index: {}]   ;;  %s3075_s9 = inlined_call_operand.vmem [shape: f32[1,128], index: 9, kind: input, shape index: {}]   ;;  %s3076_s10 = inlined_call_operand.hbm [shape: bf16[128,128], index: 10, kind: input, shape index: {}]   ;;  %s3077_s11 = inlined_call_operand.vmem [shape: f32[1,128], index: 11, kind: input, shape index: {}]   ;;  %s3078_s12 = inlined_call_operand.hbm [shape: f32[8,128], index: 12, kind: output, shape index: {}]  }
   0x1   :  { %3085 = sst [smem:[#allocation37_spill]] %s3075_s9  ;;  %s2280_s23 = scalar_lea.hbm %s3066_s0, 16 }
   0x2   :  { %3086 = sst [smem:[#allocation38_spill]] %s3077_s11  ;;  %p2281_p0 = scmp.ne.s32.totalorder %s3066_s0, %s2280_s23 }
   0x3   :  { %3087 = sst [smem:[#allocation39_spill]] %s3078_s12  ;;  %p2284_p1 = scmp.lt.u32.totalorder %s2280_s23, %s3066_s0 }
   0x5   :  { %p2286_p2 = pnand %p2284_p1, %p2281_p0 }
   0x7   :  { %2289 = shalt.err (!%p2286_p2)  }
   0x8   :  { %s2456_s28 = smov [#allocation5]  }
   0x9   :  { %18 = dma.hbm_to_smem %s3066_s0, 16, %s2456_s28, [#allocation4] }
   0xa   :  { %2444 = dma.done.wait [#allocation4], 16 }
   0xb   :  { %2445 = vsyncadd [#allocation4], 4294967280 }
   0xc   :  { %20 = sfence }
   0xd   :  { %21 = vsyncpa [#allocation7], 0 }
   0xe   :  { %22 = vsyncpa [#allocation10], 0 }
   0xf   :  { %23 = vsyncpa [#allocation13], 0 }
  0x10   :  { %24 = vsyncpa [#allocation16], 0 }
  0x11   :  { %25 = vsyncpa [#allocation8], 0  ;;  %s2457_s13 = smov [#allocation9]   ;;  %s2290_s17 = scalar_lea.hbm %s3068_s2, 512 }
  0x12   :  { %s43_s14 = sshll.u32 %s2457_s13, 4  ;;  %p2291_p3 = scmp.ne.s32.totalorder %s3068_s2, %s2290_s17  ;;  %s44_s14 = int_to_ptr.vmem [resolvable:$true] %s43_s14 }
  0x13   :  { %p2294_p4 = scmp.lt.u32.totalorder %s2290_s17, %s3068_s2 }
  0x15   :  { %p2296_p5 = pnand %p2294_p4, %p2291_p3 }
  0x17   :  { %2299 = shalt.err (!%p2296_p5)
}
  0x18   :  { %s2300_s21 = scalar_lea.vmem %s44_s14, 512  ;;  %p2305_p7 = scmp.lt.s32.totalorder %s44_s14, %s44_s14 }
  0x19   :  { %p2301_p6 = scmp.ne.s32.totalorder %s44_s14, %s2300_s21  ;;  %p2306_p8 = scmp.lt.s32.totalorder %s2300_s21, %s2300_s21 }
  0x1b   :  { %p2307_p9 = por %p2306_p8, %p2305_p7 }
  0x1d   :  { %p2308_p10 = pnand %p2307_p9, %p2301_p6 }
  0x1f   :  { %2311 = shalt.err (!%p2308_p10)
}
  0x20   :  { %s2458_s22 = smov 128   ;;  %s2459_s23 = smov 8  }
  0x21   :  { %49 = dma.hbm_to_vmem [thread:$0]  %s3068_s2, 512, %s44_s14, [#allocation10], %s2458_s22, %s2458_s22, %s2459_s23  }
  0x22   :  { %s2460_s26 = smov [#allocation12]   ;;  %s2461_s28 = smov [#allocation6]  }
  0x23   :  { %s71_s27 = sshll.u32 %s2460_s26, 4  ;;  %s31_s29 = sshll.u32 %s2461_s28, 4  ;;  %s72_s27 = int_to_ptr.vmem [resolvable:$true] %s71_s27  ;;  %s32_s29 = int_to_ptr.vmem [resolvable:$true] %s31_s29 }
  0x24   :  { %s2312_s15 = scalar_lea.hbm %s3072_s6, 1024 }
  0x25   :  { %p2313_p11 = scmp.ne.s32.totalorder %s3072_s6, %s2312_s15  ;;  %p2316_p12 = scmp.lt.u32.totalorder %s2312_s15, %s3072_s6 }
  0x27   :  { %p2318_p13 = pnand %p2316_p12, %p2313_p11 }
  0x29   :  { %2321 = shalt.err (!%p2318_p13)
}
  0x2a   :  { %s2322_s2 = scalar_lea.vmem %s72_s27, 1024  ;;  %p2327_p1 = scmp.lt.s32.totalorder %s72_s27, %s72_s27 }
  0x2b   :  { %p2323_p0 = scmp.ne.s32.totalorder %s72_s27, %s2322_s2  ;;  %p2328_p2 = scmp.lt.s32.totalorder %s2322_s2, %s2322_s2 }
  0x2d   :  { %p2329_p3 = por %p2328_p2, %p2327_p1 }
  0x2f   :  { %p2330_p4 = pnand %p2329_p3, %p2323_p0 }
  0x31   :  { %2333 = shalt.err (!%p2330_p4)
}
  0x32   :  { %s2462_s14 = smov 64   ;;  %s2463_s0 = smov 4  }
  0x33   :  { %77 = dma.hbm_to_vmem [thread:$0]  %s3072_s6, 1024, %s72_s27, [#allocation13], %s2462_s14, %s2462_s14, %s2463_s0  }
  0x34   :  { %s2334_s24 = scalar_lea.hbm %s3067_s1, 256 }
  0x35   :  { %p2335_p5 = scmp.ne.s32.totalorder %s3067_s1, %s2334_s24  ;;  %p2338_p6 = scmp.lt.u32.totalorder %s2334_s24, %s3067_s1 }
  0x37   :  { %p2340_p7 = pnand %p2338_p6, %p2335_p5 }
  0x39   :  { %2343 = shalt.err (!%p2340_p7)
}
  0x3a   :  { %s2344_s13 = scalar_lea.vmem %s32_s29, 256  ;;  %p2349_p9 = scmp.lt.s32.totalorder %s32_s29, %s32_s29 }
  0x3b   :  { %p2345_p8 = scmp.ne.s32.totalorder %s32_s29, %s2344_s13  ;;  %p2350_p10 = scmp.lt.s32.totalorder %s2344_s13, %s2344_s13 }
  0x3d   :  { %p2351_p11 = por %p2350_p10, %p2349_p9 }
  0x3f   :  { %p2352_p12 = pnand %p2351_p11, %p2345_p8 }
  0x41   :  { %2355 = shalt.err (!%p2352_p12)
}
  0x42   :  { %37 = dma.hbm_to_vmem [thread:$0]  %s3067_s1, 256, %s32_s29, [#allocation7], %s2462_s14, %s2462_s14, %s2463_s0  }
  0x43   :  { %s2464_s15 = smov [#allocation11]   ;;  %s2465_s17 = smov [#allocation14]  }
  0x44   :  { %s57_s16 = sshll.u32 %s2464_s15, 4  ;;  %s85_s18 = sshll.u32 %s2465_s17, 4  ;;  %s58_s16 = int_to_ptr.vmem [resolvable:$true] %s57_s16  ;;  %s86_s18 = int_to_ptr.vmem [resolvable:$true] %s85_s18 }
  0x45   :  { %s2356_s20 = scalar_lea.hbm %s3070_s4, 1024 }
  0x46   :  { %p2357_p13 = scmp.ne.s32.totalorder %s3070_s4, %s2356_s20  ;;  %p2360_p0 = scmp.lt.u32.totalorder %s2356_s20, %s3070_s4 }
  0x48   :  { %p2362_p1 = pnand %p2360_p0, %p2357_p13 }
  0x4a   :  { %2365 = shalt.err (!%p2362_p1)
}
  0x4b   :  { %s2366_s1 = scalar_lea.vmem %s58_s16, 1024  ;;  %p2371_p3 = scmp.lt.s32.totalorder %s58_s16, %s58_s16 }
  0x4c   :  { %p2367_p2 = scmp.ne.s32.totalorder %s58_s16, %s2366_s1  ;;  %p2372_p4 = scmp.lt.s32.totalorder %s2366_s1, %s2366_s1 }
  0x4e   :  { %p2373_p5 = por %p2372_p4, %p2371_p3 }
  0x50   :  { %p2374_p6 = pnand %p2373_p5, %p2367_p2 }
  0x52   :  { %2377 = shalt.err (!%p2374_p6)
}
  0x53   :  { %63 = dma.hbm_to_vmem [thread:$0]  %s3070_s4, 1024, %s58_s16, [#allocation10], %s2462_s14, %s2462_s14, %s2463_s0  }
  0x54   :  { %s2378_s30 = scalar_lea.hbm %s3074_s8, 1024 }
  0x55   :  { %p2379_p7 = scmp.ne.s32.totalorder %s3074_s8, %s2378_s30  ;;  %p2382_p8 = scmp.lt.u32.totalorder %s2378_s30, %s3074_s8 }
  0x57   :  { %p2384_p9 = pnand %p2382_p8, %p2379_p7 }
  0x59   :  { %2387 = shalt.err (!%p2384_p9)
}
  0x5a   :  { %s2388_s17 = scalar_lea.vmem %s86_s18, 1024  ;;  %p2393_p11 = scmp.lt.s32.totalorder %s86_s18, %s86_s18 }
  0x5b   :  { %p2389_p10 = scmp.ne.s32.totalorder %s86_s18, %s2388_s17  ;;  %p2394_p12 = scmp.lt.s32.totalorder %s2388_s17, %s2388_s17 }
  0x5d   :  { %p2395_p13 = por %p2394_p12, %p2393_p11 }
  0x5f   :  { %p2396_p0 = pnand %p2395_p13, %p2389_p10 }
  0x61   :  { %2399 = shalt.err (!%p2396_p0)
}
  0x62   :  { %91 = dma.hbm_to_vmem [thread:$0]  %s3074_s8, 1024, %s86_s18, [#allocation13], %s2462_s14, %s2462_s14, %s2463_s0  }
  0x63   :  { %s2466_s19 = smov [#allocation15]   ;;  %s2400_s22 = scalar_lea.hbm %s3076_s10, 1024 }
  0x64   :  { %s99_s2 = sshll.u32 %s2466_s19, 4  ;;  %p2401_p1 = scmp.ne.s32.totalorder %s3076_s10, %s2400_s22  ;;  %s100_s2 = int_to_ptr.vmem [resolvable:$true] %s99_s2 }
  0x65   :  { %p2404_p2 = scmp.lt.u32.totalorder %s2400_s22, %s3076_s10 }
  0x67   :  { %p2406_p3 = pnand %p2404_p2, %p2401_p1 }
  0x69   :  { %2409 = shalt.err (!%p2406_p3)
}
  0x6a   :  { %s2410_s25 = scalar_lea.vmem %s100_s2, 1024  ;;  %p2415_p5 = scmp.lt.s32.totalorder %s100_s2, %s100_s2 }
  0x6b   :  { %p2411_p4 = scmp.ne.s32.totalorder %s100_s2, %s2410_s25  ;;  %p2416_p6 = scmp.lt.s32.totalorder %s2410_s25, %s2410_s25 }
  0x6d   :  { %p2417_p7 = por %p2416_p6, %p2415_p5 }
  0x6f   :  { %p2418_p8 = pnand %p2417_p7, %p2411_p4 }
  0x71   :  { %2421 = shalt.err (!%p2418_p8)
}
  0x72   :  { %105 = dma.hbm_to_vmem [thread:$0]  %s3076_s10, 1024, %s100_s2, [#allocation16], %s2462_s14, %s2462_s14, %s2463_s0  }
  0x73   :  { %2446 = dma.done.wait [#allocation7], 256  }
  0x74   :  { %2447 = vsyncadd [#allocation7], 4294967040 }
  0x75   :  { %2448 = dma.done.wait [#allocation10], 1536  }
  0x76   :  { %2449 = vsyncadd [#allocation10], 4294965760 }
  0x77   :  { %2450 = dma.done.wait [#allocation13], 2048  }
  0x78   :  { %2451 = vsyncadd [#allocation13], 4294965248 }
  0x79   :  { %2452 = dma.done.wait [#allocation16], 1024  }
  0x7a   :  { %2453 = vsyncadd [#allocation16], 4294966272  ;;  %v2467_v0 = vmov 0.0   ;;  %vm2468_vm0 = vmmov 0   ;;  %v2160_v1 = vld [vmem:[#allocation11] sm:$0xff]   ;;  %v2161_v2 = vld [vmem:[#allocation11 + $0x8] sm:$0xff]  }
  0x7b   :  { %1946 = vmatprep.subr.bf16.mxu0 %v2467_v0  ;;  %1962 = vmatprep.mubr.msk.bf16.mxu0 %vm2468_vm0, %v2467_v0  ;;  %v2162_v3 = vld [vmem:[#allocation11 + $0x10] sm:$0xff]   ;;  %v2163_v4 = vld [vmem:[#allocation11 + $0x18] sm:$0xff]   ;;  %v2164_v5 = vld [vmem:[#allocation11 + $0x20] sm:$0xff]   ;;  %s2746_s26 = sld [smem:[#allocation5 + $0x1]]  ;;  %s2751_s28 = sld [smem:[#allocation5 + $0x2]] }
  0x7c   :  { %1966 = vmatprep.subr.bf16.mxu1 %v2467_v0  ;;  %1982 = vmatprep.mubr.msk.bf16.mxu1 %vm2468_vm0, %v2467_v0  ;;  %v2165_v6 = vld [vmem:[#allocation11 + $0x28] sm:$0xff]   ;;  %v2166_v7 = vld [vmem:[#allocation11 + $0x30] sm:$0xff]   ;;  %v2167_v8 = vld [vmem:[#allocation11 + $0x38] sm:$0xff]   ;;  %s2753_s30 = sld [smem:[#allocation5 + $0x3]]  ;;  %s2756_s13 = sld [smem:[#allocation5 + $0x4]] }
  0x7d   :  { %1947 = vmatpush3.bf16.msra.mxu0 %v2160_v1  ;;  %v127_v9 = vld [vmem:[#allocation6] sm:$0xf]  ;;  %v2168_v10 = vld [vmem:[#allocation11] sm:$0xff]   ;;  %v2169_v11 = vld [vmem:[#allocation11 + $0x8] sm:$0xff]   ;;  %s2758_s6 = sld [smem:[#allocation5 + $0x5]]  ;;  %s2760_s27 = sld [smem:[#allocation5 + $0x6]] }
  0x7e   :  { %1948 = vmatprep.subr.bf16.mxu0 %v2467_v0  ;;  %v2170_v12 = vld [vmem:[#allocation11 + $0x10] sm:$0xff]   ;;  %v2171_v13 = vld [vmem:[#allocation11 + $0x18] sm:$0xff]   ;;  %v2172_v14 = vld [vmem:[#allocation11 + $0x20] sm:$0xff]   ;;  %s2762_s15 = sld [smem:[#allocation5 + $0x7]]  ;;  %s2772_s21 = sld [smem:[#allocation5 + $0x8]] }
  0x7f   :  { %v2173_v15 = vld [vmem:[#allocation11 + $0x28] sm:$0xff]   ;;  %v2174_v16 = vld [vmem:[#allocation11 + $0x30] sm:$0xff]   ;;  %v2175_v17 = vld [vmem:[#allocation11 + $0x38] sm:$0xff]   ;;  %s2774_s22 = sld [smem:[#allocation5 + $0x9]]  ;;  %s2776_s23 = sld [smem:[#allocation5 + $0xa]] }
  0x80   :  { %v369_v18 = vld [vmem:[#allocation6 + $0x4] sm:$0xf]  ;;  %v2176_v19 = vld [vmem:[#allocation11] sm:$0xff]   ;;  %v2177_v20 = vld [vmem:[#allocation11 + $0x8] sm:$0xff]   ;;  %s2778_s24 = sld [smem:[#allocation5 + $0xb]]  ;;  %s2780_s1 = sld [smem:[#allocation5 + $0xc]] }
  0x81   :  { %1949 = vmatpush3.bf16.msra.mxu0 %v2161_v2  ;;  %v2178_v21 = vld [vmem:[#allocation11 + $0x10] sm:$0xff]   ;;  %v2179_v22 = vld [vmem:[#allocation11 + $0x18] sm:$0xff]   ;;  %v2180_v23 = vld [vmem:[#allocation11 + $0x20] sm:$0xff]   ;;  %3088 = sst [smem:[#allocation24_spill]] %s2751_s28  ;;  %s2782_s29 = sld [smem:[#allocation5 + $0xd]] }
  0x82   :  { %1950 = vmatprep.subr.bf16.mxu0 %v2467_v0  ;;  %v2181_v24 = vld [vmem:[#allocation11 + $0x28] sm:$0xff]   ;;  %v2182_v25 = vld [vmem:[#allocation11 + $0x30] sm:$0xff]   ;;  %v2183_v26 = vld [vmem:[#allocation11 + $0x38] sm:$0xff]   ;;  %s2784_s25 = sld [smem:[#allocation5 + $0xe]]  ;;  %s2786_s8 = sld [smem:[#allocation5 + $0xf]] }
  0x83   :  { %v613_v27 = vld [vmem:[#allocation6 + $0x8] sm:$0xf]  ;;  %v2184_v28 = vld [vmem:[#allocation11] sm:$0xff]   ;;  %v2185_v29 = vld [vmem:[#allocation11 + $0x8] sm:$0xff]   ;;  %3089 = sst [smem:[#allocation25_spill]] %s2760_s27  ;;  %s2808_s10 = sld [smem:[#allocation5 + $0x10]] }
  0x84   :  { %v2186_v30 = vld [vmem:[#allocation11 + $0x10] sm:$0xff]   ;;  %v2187_v31 = vld [vmem:[#allocation11 + $0x18] sm:$0xff]   ;;  %v2188_v32 = vld [vmem:[#allocation11 + $0x20] sm:$0xff]   ;;  %3090 = sst [smem:[#allocation26_spill]] %s2762_s15  ;;  %s2814_s0 = sld [smem:[#allocation5 + $0x11]] }
  0x85   :  { %1951 = vmatpush3.bf16.msra.mxu0 %v2162_v3  ;;  %v2189_v33 = vld [vmem:[#allocation11 + $0x28] sm:$0xff]   ;;  %v2192_v34 = vld [vmem:[#allocation12] sm:$0xff]   ;;  %v2190_v35 = vld [vmem:[#allocation11 + $0x30] sm:$0xff]   ;;  %3091 = sst [smem:[#allocation27_spill]] %s2774_s22  ;;  %s2848_s17 = sld [smem:[#allocation5 + $0x12]] }
  0x86   :  { %1952 = vmatprep.subr.bf16.mxu0 %v2467_v0  ;;  %1967 = vmatpush3.bf16.msra.mxu1 %v2192_v34  ;;  %v2193_v36 = vld [vmem:[#allocation12 + $0x8] sm:$0xff]   ;;  %v2191_v37 = vld [vmem:[#allocation11 + $0x38] sm:$0xff]   ;;  %v2194_v38 = vld [vmem:[#allocation12 + $0x10] sm:$0xff]   ;;  %s2850_s28 = sld [smem:[#allocation5 + $0x13]]  ;;  %s2852_s15 = sld [smem:[#allocation5 + $0x14]] }
  0x87   :  { %1968 = vmatprep.subr.bf16.mxu1 %v2467_v0  ;;  %v857_v39 = vld [vmem:[#allocation6 + $0xc] sm:$0xf]  ;;  %v2196_v41 = vld [vmem:[#allocation12 + $0x20] sm:$0xff]   ;;  %v2197_v42 = vld [vmem:[#allocation12 + $0x28] sm:$0xff]   ;;  %s2860_s20 = sld [smem:[#allocation5 + $0x16]]  ;;  %s3094_s18 = sld [smem:[#allocation24_spill]] }
  0x88   :  { %v2195_v40 = vld [vmem:[#allocation12 + $0x18] sm:$0xff]   ;;  %v2198_v43 = vld [vmem:[#allocation12 + $0x30] sm:$0xff]   ;;  %v2691_v45 = vld [vmem:[%s3071_s5] ss:$0 sm:$0xff]  ;;  %s2854_s5 = sld [smem:[#allocation5 + $0x15]]  ;;  %s2866_s2 = sld [smem:[#allocation5 + $0x17]] }
  0x89   :  { %1953 = vmatpush3.bf16.msra.mxu0 %v2163_v4  ;;  %v2199_v44 = vld [vmem:[#allocation12 + $0x38] sm:$0xff]   ;;  %v2200_v56 = vld [vmem:[#allocation12] sm:$0xff]   ;;  %v2201_v62 = vld [vmem:[#allocation12 + $0x8] sm:$0xff]   ;;  %s2868_s27 = sld [smem:[#allocation5 + $0x18]]  ;;  %s2870_s14 = sld [smem:[#allocation5 + $0x19]] }
  0x8a   :  { %1954 = vmatprep.subr.bf16.mxu0 %v2467_v0  ;;  %1969 = vmatpush3.bf16.msra.mxu1 %v2193_v36  ;;  %v2202_v2 = vld [vmem:[#allocation12 + $0x10] sm:$0xff]   ;;  %v2203_v3 = vld [vmem:[#allocation12 + $0x18] sm:$0xff]   ;;  %v2204_v4 = vld [vmem:[#allocation12 + $0x20] sm:$0xff]   ;;  %3092 = sst [smem:[#allocation28_spill]] %s2814_s0  ;;  %s2872_s12 = sld [smem:[#allocation5 + $0x1a]] }
  0x8b   :  { %1970 = vmatprep.subr.bf16.mxu1 %v2467_v0  ;;  %s2874_s4 = sld [smem:[#allocation5 + $0x1b]]  ;;  %s2876_s19 = sld [smem:[#allocation5 + $0x1c]] }
  0x8c   :  { %s2878_s9 = sld [smem:[#allocation5 + $0x1d]]  ;;  %s3111_s22 = scalar_lea.vmem %s3069_s3, %s2756_s13 }
  0x8d   :  { %1955 = vmatpush3.bf16.msra.mxu0 %v2164_v5  ;;  %3093 = sst [smem:[#allocation29_spill]] %s2860_s20  ;;  %s3107_s20 = sld [smem:[#allocation27_spill]] }
  0x8e   :  { %1956 = vmatprep.subr.bf16.mxu0 %v2467_v0  ;;  %1971 = vmatpush3.bf16.msra.mxu1 %v2194_v38  ;;  %3095 = sst [smem:[#allocation24_spill]] %s2866_s2  ;;  %s3103_s2 = scalar_lea.vmem %s3069_s3, %s2746_s26 }
  0x8f   :  { %1972 = vmatprep.subr.bf16.mxu1 %v2467_v0  ;;  %3096 = sst [smem:[#allocation30_spill]] %s2868_s27  ;;  %s1231_s26 = scalar_lea.vmem %s3069_s3, %s2850_s28 }
  0x90   :  { %3097 = sst [smem:[#allocation31_spill]] %s2870_s14  ;;  %s3110_s14 = sld [smem:[#allocation26_spill]] }
  0x91   :  { %1957 = vmatpush3.bf16.msra.mxu0 %v2165_v6  ;;  %3098 = sst [smem:[#allocation32_spill]] %s2872_s12  ;;  %s3104_s12 = sld [smem:[#allocation25_spill]] }
  0x92   :  { %1958 = vmatprep.subr.bf16.mxu0 %v2467_v0  ;;  %1973 = vmatpush3.bf16.msra.mxu1 %v2195_v40  ;;  %v2218_v40 = vld [vmem:[#allocation12 + $0x10] sm:$0xff]   ;;  %3099 = sst [smem:[#allocation33_spill]] %s2874_s4  ;;  %s2890_s4 = sld [smem:[#allocation5 + $0x1e]] }
  0x93   :  { %1974 = vmatprep.subr.bf16.mxu1 %v2467_v0  ;;  %3100 = sst [smem:[#allocation34_spill]] %s2876_s19  ;;  %s2892_s19 = sld [smem:[#allocation5 + $0x1f]] }
  0x94   :  { %3101 = sst [smem:[#allocation35_spill]] %s2878_s9  ;;  %s3116_s27 = scalar_lea.vmem %s3069_s3, %s2776_s23 }
  0x95   :  { %1959 = vmatpush3.bf16.msra.mxu0 %v2166_v7  ;;  %v2205_v7 = vld [vmem:[#allocation12 + $0x28] sm:$0xff]   ;;  %s1268_s13 = scalar_lea.vmem %s3069_s3, %s2852_s15  ;;  %s3119_s0 = scalar_lea.vmem %s3069_s3, %s2778_s24 }
  0x96   :  { %1960 = vmatprep.subr.bf16.mxu0 %v2467_v0  ;;  %1975 = vmatpush3.bf16.msra.mxu1 %v2196_v41  ;;  %v2219_v41 = vld [vmem:[#allocation12 + $0x18] sm:$0xff]   ;;  %s3120_s9 = scalar_lea.vmem %s3069_s3, %s2780_s1  ;;  %s2469_s24 = smov [#allocation17]  }
  0x97   :  { %1976 = vmatprep.subr.bf16.mxu1 %v2467_v0 }
  0x98   :  { %3105 = sst [smem:[#allocation25_spill]] %s2890_s4  ;;  %s1194_s4 = scalar_lea.vmem %s3069_s3, %s2848_s17 }
  0x99   :  { %1961 = vmatpush3.bf16.msra.mxu0 %v2167_v8  ;;  %v2206_v8 = vld [vmem:[#allocation12 + $0x30] sm:$0xff]   ;;  %3106 = sst [smem:[#allocation36_spill]] %s2892_s19  ;;  %s3113_s19 = scalar_lea.vmem %s3069_s3, %s3104_s12 }
  0x9a   :  { %1986 = vmatprep.subr.bf16.mxu0 %v2467_v0  ;;  %1977 = vmatpush3.bf16.msra.mxu1 %v2197_v42  ;;  %v2220_v42 = vld [vmem:[#allocation12 + $0x20] sm:$0xff]   ;;  %s1643_s12 = sshll.u32 %s2469_s24, 4  ;;  %s1644_s12 = int_to_ptr.vmem [resolvable:$true] %s1643_s12 }
  0x9b   :  { %1978 = vmatprep.subr.bf16.mxu1 %v2467_v0  ;;  %p2427_p10 = scmp.lt.s32.totalorder %s1644_s12, %s1644_s12 }
  0x9c   :  { %1963 = vmatmul.mubr.bf16.vlgmr.msra.gmra.mrb[0].mxu0 %v127_v9  ;;  %v2207_v9 = vld [vmem:[#allocation12 + $0x38] sm:$0xff]  }
  0x9d   :  { %1987 = vmatpush3.bf16.msra.mxu0 %v2168_v10  ;;  %2002 = vmatprep.mubr.msk.bf16.mxu0 %vm2468_vm0, %v2467_v0 }
  0x9e   :  { %1988 = vmatprep.subr.bf16.mxu0 %v2467_v0  ;;  %1979 = vmatpush3.bf16.msra.mxu1 %v2198_v43 }
  0x9f   :  { %1980 = vmatprep.subr.bf16.mxu1 %v2467_v0 }
  0xa1   :  { %1989 = vmatpush3.bf16.msra.mxu0 %v2169_v11 }
  0xa2   :  { %1990 = vmatprep.subr.bf16.mxu0 %v2467_v0  ;;  %1981 = vmatpush3.bf16.msra.mxu1 %v2199_v44 }
  0xa3   :  { %2006 = vmatprep.subr.bf16.mxu1 %v2467_v0 }
  0xa5   :  { %1991 = vmatpush3.bf16.msra.mxu0 %v2170_v12  ;;  %v2208_v12 = vld [vmem:[#allocation12] sm:$0xff]  }
  0xa6   :  { %1992 = vmatprep.subr.bf16.mxu0 %v2467_v0 }
  0xa9   :  { %1993 = vmatpush3.bf16.msra.mxu0 %v2171_v13 }
  0xaa   :  { %1994 = vmatprep.subr.bf16.mxu0 %v2467_v0 }
  0xad   :  { %1995 = vmatpush3.bf16.msra.mxu0 %v2172_v14 }
  0xae   :  { %1996 = vmatprep.subr.bf16.mxu0 %v2467_v0 }
  0xb1   :  { %1997 = vmatpush3.bf16.msra.mxu0 %v2173_v15 }
  0xb2   :  { %1998 = vmatprep.subr.bf16.mxu0 %v2467_v0 }
  0xb5   :  { %1999 = vmatpush3.bf16.msra.mxu0 %v2174_v16 }
  0xb6   :  { %2000 = vmatprep.subr.bf16.mxu0 %v2467_v0 }
  0xb9   :  { %2001 = vmatpush3.bf16.msra.mxu0 %v2175_v17 }
  0xba   :  { %2026 = vmatprep.subr.bf16.mxu0 %v2467_v0 }
  0xbc   :  { %2003 = vmatmul.mubr.bf16.vlgmr.msra.gmra.mrb[4].mxu0 %v369_v18  ;;  %v2209_v18 = vld [vmem:[#allocation12 + $0x8] sm:$0xff]  }
  0xbd   :  { %2027 = vmatpush3.bf16.msra.mxu0 %v2176_v19  ;;  %2042 = vmatprep.mubr.msk.bf16.mxu0 %vm2468_vm0, %v2467_v0 }
  0xbe   :  { %2028 = vmatprep.subr.bf16.mxu0 %v2467_v0 }
  0xc1   :  { %2029 = vmatpush3.bf16.msra.mxu0 %v2177_v20 }
  0xc2   :  { %2030 = vmatprep.subr.bf16.mxu0 %v2467_v0 }
  0xc5   :  { %2031 = vmatpush3.bf16.msra.mxu0 %v2178_v21  ;;  %v2210_v21 = vld [vmem:[#allocation12 + $0x10] sm:$0xff]  }
  0xc6   :  { %2032 = vmatprep.subr.bf16.mxu0 %v2467_v0 }
  0xc9   :  { %2033 = vmatpush3.bf16.msra.mxu0 %v2179_v22  ;;  %v2211_v22 = vld [vmem:[#allocation12 + $0x18] sm:$0xff]  }
  0xca   :  { %2034 = vmatprep.subr.bf16.mxu0 %v2467_v0 }
  0xcd   :  { %2035 = vmatpush3.bf16.msra.mxu0 %v2180_v23  ;;  %v2212_v23 = vld [vmem:[#allocation12 + $0x20] sm:$0xff]  }
  0xce   :  { %2036 = vmatprep.subr.bf16.mxu0 %v2467_v0 }
  0xd1   :  { %2037 = vmatpush3.bf16.msra.mxu0 %v2181_v24 }
  0xd2   :  { %2038 = vmatprep.subr.bf16.mxu0 %v2467_v0 }
  0xd5   :  { %2039 = vmatpush3.bf16.msra.mxu0 %v2182_v25 }
  0xd6   :  { %2040 = vmatprep.subr.bf16.mxu0 %v2467_v0 }
  0xd9   :  { %2041 = vmatpush3.bf16.msra.mxu0 %v2183_v26  ;;  %v2213_v26 = vld [vmem:[#allocation12 + $0x28] sm:$0xff]  }
  0xda   :  { %2066 = vmatprep.subr.bf16.mxu0 %v2467_v0 }
  0xdc   :  { %2043 = vmatmul.mubr.bf16.vlgmr.msra.gmra.mrb[8].mxu0 %v613_v27  ;;  %v2214_v27 = vld [vmem:[#allocation12 + $0x30] sm:$0xff]  }
  0xdd   :  { %2067 = vmatpush3.bf16.msra.mxu0 %v2184_v28  ;;  %2082 = vmatprep.mubr.msk.bf16.mxu0 %vm2468_vm0, %v2467_v0  ;;  %v2215_v28 = vld [vmem:[#allocation12 + $0x38] sm:$0xff]  }
  0xde   :  { %2068 = vmatprep.subr.bf16.mxu0 %v2467_v0 }
  0xe1   :  { %2069 = vmatpush3.bf16.msra.mxu0 %v2185_v29 }
  0xe2   :  { %2070 = vmatprep.subr.bf16.mxu0 %v2467_v0 }
  0xe5   :  { %2071 = vmatpush3.bf16.msra.mxu0 %v2186_v30 }
  0xe6   :  { %2072 = vmatprep.subr.bf16.mxu0 %v2467_v0 }
  0xe9   :  { %2073 = vmatpush3.bf16.msra.mxu0 %v2187_v31  ;;  %v2216_v31 = vld [vmem:[#allocation12] sm:$0xff]  }
  0xea   :  { %2074 = vmatprep.subr.bf16.mxu0 %v2467_v0 }
  0xed   :  { %2075 = vmatpush3.bf16.msra.mxu0 %v2188_v32 }
  0xee   :  { %2076 = vmatprep.subr.bf16.mxu0 %v2467_v0 }
  0xf1   :  { %2077 = vmatpush3.bf16.msra.mxu0 %v2189_v33 }
  0xf2   :  { %2078 = vmatprep.subr.bf16.mxu0 %v2467_v0 }
  0xf5   :  { %2079 = vmatpush3.bf16.msra.mxu0 %v2190_v35 }
  0xf6   :  { %2080 = vmatprep.subr.bf16.mxu0 %v2467_v0 }
  0xf9   :  { %2081 = vmatpush3.bf16.msra.mxu0 %v2191_v37  ;;  %v2217_v37 = vld [vmem:[#allocation12 + $0x8] sm:$0xff]  }
  0xfa   :  { %2106 = vmatprep.subr.bf16.mxu0 %v2467_v0 }
  0xfc   :  { %2083 = vmatmul.mubr.bf16.vlgmr.msra.gmra.mrb[12].mxu0 %v857_v39 }
  0xfd   :  { %2122 = vmatprep.mubr.msk.bf16.mxu0 %vm2468_vm0, %v2467_v0 }
 0x16f   :  { %v233_v46 = vpop.f32.mrb[0].mxu0 }
 0x170   :  { %v234_v47 = vadd.f32 %v2691_v45, %v233_v46  ;;  %v1964_v48 = vpop.f32.mrb[1].mxu0  ;;  %v2222_v46 = vld [vmem:[#allocation12 + $0x30] sm:$0xff]  }
 0x171   :  { %v236_v49 = vpop.f32.mrb[2].mxu0 }
 0x172   :  { %v1734_v50 = vmul.f32 -1.442695, %v234_v47  ;;  %v1965_v51 = vpop.f32.mrb[3].mxu0 }
 0x173   :  { %v2224_v51 = vld [vmem:[#allocation14] sm:$0xff]  }
 0x174   :  { %2240 = vpow2.f32 %v1734_v50  ;;  %2107 = vmatpush3.bf16.msra.mxu0 %v2224_v51 }
 0x175   :  { %2108 = vmatprep.subr.bf16.mxu0 %v2467_v0 }
 0x17e   :  { %v2241_v52 = vpop.eup %2240 }
 0x17f   :  { %v242_v53 = vadd.f32 1.0, %v2241_v52  ;;  %v2225_v52 = vld [vmem:[#allocation14 + $0x8] sm:$0xff]  }
 0x180   :  { %2109 = vmatpush3.bf16.msra.mxu0 %v2225_v52 }
 0x181   :  { %2242 = vrcp.f32 %v242_v53  ;;  %v2733_v53 = vld [vmem:[%s3073_s7] ss:$0 sm:$0xff]  ;;  %2110 = vmatprep.subr.bf16.mxu0 %v2467_v0  ;;  %s2744_s7 = sld [smem:[#allocation5]] }
 0x187   :  { %s3102_s16 = scalar_lea.vmem %s3069_s3, %s2744_s7  ;;  %s3108_s7 = scalar_lea.vmem %s3069_s3, %s3094_s18 }
 0x188   :  { %s3112_s18 = scalar_lea.vmem %s3069_s3, %s2758_s6  ;;  %s1305_s6 = scalar_lea.vmem %s3069_s3, %s2854_s5 }
 0x189   :  { %v1290_v51 = vld [vmem:[%s3112_s18] sm:$0x1]  ;;  %s3115_s18 = scalar_lea.vmem %s3069_s3, %s3107_s20  ;;  %s3125_s20 = scalar_lea.vmem %s3069_s3, %s2808_s10 }
 0x18a   :  { %s3128_s5 = sld [smem:[#allocation30_spill]] }
 0x18b   :  { %v2243_v54 = vpop.eup %2242 }
 0x18c   :  { %v245_v55 = vmul.f32 %v2243_v54, %v234_v47  ;;  %v2223_v47 = vld [vmem:[#allocation12 + $0x38] sm:$0xff]  }
 0x18e   :  { %v246_v57 = vpack.c.bf16 %v245_v55, %v245_v55 }
 0x18f   :  { %v475_v58 = vpop.f32.mrb[4].mxu0 }
 0x190   :  { %v476_v59 = vadd.f32 %v2691_v45, %v475_v58  ;;  %1983 = vmatmul.mubr.bf16.vlgmr.msra.gmra.mrb[0].mxu1 %v246_v57  ;;  %v2004_v60 = vpop.f32.mrb[5].mxu0  ;;  %v2226_v57 = vld [vmem:[#allocation14 + $0x10] sm:$0xff]  }
 0x191   :  { %v478_v61 = vpop.f32.mrb[6].mxu0  ;;  %2007 = vmatpush3.bf16.msra.mxu1 %v2200_v56  ;;  %2022 = vmatprep.mubr.msk.bf16.mxu1 %vm2468_vm0, %v2467_v0 }
 0x192   :  { %v1754_v63 = vmul.f32 -1.442695, %v476_v59  ;;  %v2005_v1 = vpop.f32.mrb[7].mxu0  ;;  %2008 = vmatprep.subr.bf16.mxu1 %v2467_v0  ;;  %2111 = vmatpush3.bf16.msra.mxu0 %v2226_v57  ;;  %v2227_v61 = vld [vmem:[#allocation14 + $0x18] sm:$0xff]  }
 0x193   :  { %2112 = vmatprep.subr.bf16.mxu0 %v2467_v0 }
 0x194   :  { %2244 = vpow2.f32 %v1754_v63  ;;  %v2229_v63 = vld [vmem:[#allocation14 + $0x28] sm:$0xff]  }
 0x195   :  { %2009 = vmatpush3.bf16.msra.mxu1 %v2201_v62  ;;  %v2228_v62 = vld [vmem:[#allocation14 + $0x20] sm:$0xff]  }
 0x196   :  { %2010 = vmatprep.subr.bf16.mxu1 %v2467_v0  ;;  %2113 = vmatpush3.bf16.msra.mxu0 %v2227_v61 }
 0x197   :  { %2114 = vmatprep.subr.bf16.mxu0 %v2467_v0 }
 0x199   :  { %2011 = vmatpush3.bf16.msra.mxu1 %v2202_v2 }
 0x19a   :  { %2012 = vmatprep.subr.bf16.mxu1 %v2467_v0  ;;  %2115 = vmatpush3.bf16.msra.mxu0 %v2228_v62 }
 0x19b   :  { %2116 = vmatprep.subr.bf16.mxu0 %v2467_v0 }
 0x19d   :  { %2013 = vmatpush3.bf16.msra.mxu1 %v2203_v3  ;;  %v2230_v3 = vld [vmem:[#allocation14 + $0x30] sm:$0xff]  }
 0x19e   :  { %v2245_v5 = vpop.eup %2244  ;;  %2014 = vmatprep.subr.bf16.mxu1 %v2467_v0  ;;  %2117 = vmatpush3.bf16.msra.mxu0 %v2229_v63 }
 0x19f   :  { %v484_v6 = vadd.f32 1.0, %v2245_v5  ;;  %2118 = vmatprep.subr.bf16.mxu0 %v2467_v0 }
 0x1a1   :  { %2246 = vrcp.f32 %v484_v6  ;;  %2015 = vmatpush3.bf16.msra.mxu1 %v2204_v4  ;;  %v2231_v4 = vld [vmem:[#allocation14 + $0x38] sm:$0xff]   ;;  %v365_v6 = vld [vmem:[#allocation9] sm:$0xff] }
 0x1a2   :  { %2016 = vmatprep.subr.bf16.mxu1 %v2467_v0  ;;  %2119 = vmatpush3.bf16.msra.mxu0 %v2230_v3 }
 0x1a3   :  { %2120 = vmatprep.subr.bf16.mxu0 %v2467_v0 }
 0x1a5   :  { %2017 = vmatpush3.bf16.msra.mxu1 %v2205_v7 }
 0x1a6   :  { %2018 = vmatprep.subr.bf16.mxu1 %v2467_v0  ;;  %2121 = vmatpush3.bf16.msra.mxu0 %v2231_v4 }
 0x1a9   :  { %2019 = vmatpush3.bf16.msra.mxu1 %v2206_v8 }
 0x1aa   :  { %2020 = vmatprep.subr.bf16.mxu1 %v2467_v0 }
 0x1ab   :  { %v2247_v10 = vpop.eup %2246 }
 0x1ac   :  { %v487_v11 = vmul.f32 %v2247_v10, %v476_v59 }
 0x1ad   :  { %2021 = vmatpush3.bf16.msra.mxu1 %v2207_v9 }
 0x1ae   :  { %v488_v13 = vpack.c.bf16 %v487_v11, %v487_v11  ;;  %2046 = vmatprep.subr.bf16.mxu1 %v2467_v0 }
 0x1af   :  { %v719_v14 = vpop.f32.mrb[8].mxu0 }
 0x1b0   :  { %v720_v15 = vadd.f32 %v2691_v45, %v719_v14  ;;  %2023 = vmatmul.mubr.bf16.vlgmr.msra.gmra.mrb[4].mxu1 %v488_v13  ;;  %v2044_v16 = vpop.f32.mrb[9].mxu0 }
 0x1b1   :  { %v722_v17 = vpop.f32.mrb[10].mxu0  ;;  %2047 = vmatpush3.bf16.msra.mxu1 %v2208_v12  ;;  %2062 = vmatprep.mubr.msk.bf16.mxu1 %vm2468_vm0, %v2467_v0 }
 0x1b2   :  { %v1774_v19 = vmul.f32 -1.442695, %v720_v15  ;;  %v2045_v20 = vpop.f32.mrb[11].mxu0  ;;  %2048 = vmatprep.subr.bf16.mxu1 %v2467_v0 }
 0x1b4   :  { %2248 = vpow2.f32 %v1774_v19 }
 0x1b5   :  { %2049 = vmatpush3.bf16.msra.mxu1 %v2209_v18  ;;  %v608_v18 = vld [vmem:[#allocation9 + $0x8] sm:$0xff] }
 0x1b6   :  { %2050 = vmatprep.subr.bf16.mxu1 %v2467_v0 }
 0x1b9   :  { %2051 = vmatpush3.bf16.msra.mxu1 %v2210_v21 }
 0x1ba   :  { %2052 = vmatprep.subr.bf16.mxu1 %v2467_v0 }
 0x1bd   :  { %2053 = vmatpush3.bf16.msra.mxu1 %v2211_v22 }
 0x1be   :  { %v2249_v24 = vpop.eup %2248  ;;  %2054 = vmatprep.subr.bf16.mxu1 %v2467_v0 }
 0x1bf   :  { %v728_v25 = vadd.f32 1.0, %v2249_v24 }
 0x1c1   :  { %2250 = vrcp.f32 %v728_v25  ;;  %2055 = vmatpush3.bf16.msra.mxu1 %v2212_v23 }
 0x1c2   :  { %2056 = vmatprep.subr.bf16.mxu1 %v2467_v0 }
 0x1c5   :  { %2057 = vmatpush3.bf16.msra.mxu1 %v2213_v26 }
 0x1c6   :  { %2058 = vmatprep.subr.bf16.mxu1 %v2467_v0 }
 0x1c9   :  { %2059 = vmatpush3.bf16.msra.mxu1 %v2214_v27 }
 0x1ca   :  { %2060 = vmatprep.subr.bf16.mxu1 %v2467_v0 }
 0x1cb   :  { %v2251_v29 = vpop.eup %2250 }
 0x1cc   :  { %v731_v30 = vmul.f32 %v2251_v29, %v720_v15 }
 0x1cd   :  { %2061 = vmatpush3.bf16.msra.mxu1 %v2215_v28 }
 0x1ce   :  { %v732_v32 = vpack.c.bf16 %v731_v30, %v731_v30  ;;  %2086 = vmatprep.subr.bf16.mxu1 %v2467_v0  ;;  %v852_v30 = vld [vmem:[#allocation9 + $0x10] sm:$0xff] }
 0x1cf   :  { %v963_v33 = vpop.f32.mrb[12].mxu0 }
 0x1d0   :  { %v964_v34 = vadd.f32 %v2691_v45, %v963_v33  ;;  %2063 = vmatmul.mubr.bf16.vlgmr.msra.gmra.mrb[8].mxu1 %v732_v32  ;;  %v2084_v35 = vpop.f32.mrb[13].mxu0  ;;  %v2221_v45 = vld [vmem:[#allocation12 + $0x28] sm:$0xff]  }
 0x1d1   :  { %v966_v36 = vpop.f32.mrb[14].mxu0  ;;  %2087 = vmatpush3.bf16.msra.mxu1 %v2216_v31  ;;  %2102 = vmatprep.mubr.msk.bf16.mxu1 %vm2468_vm0, %v2467_v0 }
 0x1d2   :  { %v1794_v38 = vmul.f32 -1.442695, %v964_v34  ;;  %v2085_v39 = vpop.f32.mrb[15].mxu0  ;;  %2088 = vmatprep.subr.bf16.mxu1 %v2467_v0 }
 0x1d4   :  { %2252 = vpow2.f32 %v1794_v38 }
 0x1d5   :  { %2089 = vmatpush3.bf16.msra.mxu1 %v2217_v37 }
 0x1d6   :  { %2090 = vmatprep.subr.bf16.mxu1 %v2467_v0 }
 0x1d9   :  { %2091 = vmatpush3.bf16.msra.mxu1 %v2218_v40 }
 0x1da   :  { %2092 = vmatprep.subr.bf16.mxu1 %v2467_v0 }
 0x1dd   :  { %2093 = vmatpush3.bf16.msra.mxu1 %v2219_v41  ;;  %v1104_v41 = vld [vmem:[%s3102_s16] sm:$0x1]  ;;  %s3114_s16 = scalar_lea.vmem %s3069_s3, %s2772_s21  ;;  %s3124_s21 = scalar_lea.vmem %s3069_s3, %s2786_s8 }
 0x1de   :  { %v2253_v43 = vpop.eup %2252  ;;  %2094 = vmatprep.subr.bf16.mxu1 %v2467_v0  ;;  %v1111_v57 = vld [vmem:[%s3114_s16] sm:$0x1]  ;;  %s3118_s16 = scalar_lea.vmem %s3069_s3, %s3110_s14  ;;  %s3122_s14 = sld [smem:[#allocation29_spill]] }
 0x1df   :  { %v972_v44 = vadd.f32 1.0, %v2253_v43  ;;  %v1142_v43 = vld [vmem:[%s3103_s2] sm:$0x1]  ;;  %s3109_s2 = scalar_lea.vmem %s3069_s3, %s2753_s30  ;;  %s3123_s30 = scalar_lea.vmem %s3069_s3, %s2784_s25 }
 0x1e0   :  { %s3127_s25 = sld [smem:[#allocation24_spill]] }
 0x1e1   :  { %2254 = vrcp.f32 %v972_v44  ;;  %2095 = vmatpush3.bf16.msra.mxu1 %v2220_v42  ;;  %v1096_v44 = vld [vmem:[#allocation9 + $0x18] sm:$0xff] }
 0x1e2   :  { %2096 = vmatprep.subr.bf16.mxu1 %v2467_v0 }
 0x1e5   :  { %2097 = vmatpush3.bf16.msra.mxu1 %v2221_v45 }
 0x1e6   :  { %2098 = vmatprep.subr.bf16.mxu1 %v2467_v0  ;;  %s1379_s28 = scalar_lea.vmem %s3069_s3, %s3127_s25 }
 0x1e9   :  { %2099 = vmatpush3.bf16.msra.mxu1 %v2222_v46  ;;  %v1179_v46 = vld [vmem:[%s3108_s7] sm:$0x1]  ;;  %s3129_s7 = sld [smem:[#allocation31_spill]] }
 0x1ea   :  { %2100 = vmatprep.subr.bf16.mxu1 %v2467_v0 }
 0x1eb   :  { %v2255_v48 = vpop.eup %2254 }
 0x1ec   :  { %v975_v49 = vmul.f32 %v2255_v48, %v964_v34  ;;  %v1216_v48 = vld [vmem:[%s3109_s2] sm:$0x1]  ;;  %s3133_s2 = sld [smem:[#allocation35_spill]] }
 0x1ed   :  { %2101 = vmatpush3.bf16.msra.mxu1 %v2223_v47 }
 0x1ee   :  { %v976_v50 = vpack.c.bf16 %v975_v49, %v975_v49  ;;  %2126 = vmatprep.subr.bf16.mxu1 %v2467_v0 }
 0x1ef   :  { %s1166_s1 = scalar_lea.vmem %s3069_s3, %s3129_s7 }
 0x1f0   :  { %2103 = vmatmul.mubr.bf16.vlgmr.msra.gmra.mrb[12].mxu1 %v976_v50  ;;  %v1253_v50 = vld [vmem:[%s3111_s22] sm:$0x1] }
 0x1f1   :  { %2142 = vmatprep.mubr.msk.bf16.mxu1 %vm2468_vm0, %v2467_v0 }
 0x263   :  { %v352_v54 = vpop.f32.mrb[0].mxu1 }
 0x264   :  { %v353_v55 = vadd.f32 %v2733_v53, %v352_v54  ;;  %v1984_v56 = vpop.f32.mrb[1].mxu1 }
 0x265   :  { %v355_v58 = vpop.f32.mrb[2].mxu1 }
 0x266   :  { %v1744_v59 = vmul.f32 -1.442695, %v353_v55  ;;  %v1985_v60 = vpop.f32.mrb[3].mxu1  ;;  %v1149_v58 = vld [vmem:[%s3115_s18] sm:$0x1] }
 0x267   :  { %v1364_v60 = vld [vmem:[%s3118_s16] sm:$0x1] }
 0x268   :  { %2256 = vpow2.f32 %v1744_v59  ;;  %v1186_v59 = vld [vmem:[%s3116_s27] sm:$0x1]  ;;  %s3121_s27 = scalar_lea.vmem %s3069_s3, %s2782_s29 }
 0x269   :  { %v1297_v3 = vld [vmem:[%s3121_s27] sm:$0x1] }
 0x272   :  { %v2257_v1 = vpop.eup %2256 }
 0x273   :  { %v361_v2 = vadd.f32 1.0, %v2257_v1  ;;  %v1223_v1 = vld [vmem:[%s3119_s0] sm:$0x1] }
 0x275   :  { %2258 = vrcp.f32 %v361_v2  ;;  %v1260_v2 = vld [vmem:[%s3120_s9] sm:$0x1]  ;;  %s1342_s9 = scalar_lea.vmem %s3069_s3, %s3122_s14  ;;  %s1130_s14 = scalar_lea.vmem %s3069_s3, %s3128_s5 }
 0x27f   :  { %v2259_v5 = vpop.eup %2258 }
 0x280   :  { %v364_v7 = vmul.f32 %v2259_v5, %v353_v55  ;;  %v1327_v55 = vld [vmem:[%s3113_s19] sm:$0x1]  ;;  %s3117_s19 = sld [smem:[#allocation28_spill]] }
 0x282   :  { %v366_v8 = vmul.f32 %v365_v6, %v364_v7 }
 0x283   :  { %v594_v9 = vpop.f32.mrb[4].mxu1 }
 0x284   :  { %367 = vst [vmem:[#allocation2] sm:$0xff] %v366_v8  ;;  %v595_v10 = vadd.f32 %v2733_v53, %v594_v9  ;;  %v2024_v11 = vpop.f32.mrb[5].mxu1  ;;  %v1334_v8 = vld [vmem:[%s3123_s30] sm:$0x1]  ;;  %s3132_s30 = sld [smem:[#allocation34_spill]] }
 0x285   :  { %v597_v12 = vpop.f32.mrb[6].mxu1  ;;  %v1371_v9 = vld [vmem:[%s3124_s21] sm:$0x1]  ;;  %s3134_s21 = sld [smem:[#allocation25_spill]] }
 0x286   :  { %v1764_v13 = vmul.f32 -1.442695, %v595_v10  ;;  %v2025_v14 = vpop.f32.mrb[7].mxu1  ;;  %s3126_s22 = scalar_lea.vmem %s3069_s3, %s3117_s19  ;;  %s1314_s19 = scalar_lea.vmem %s3069_s3, %s3133_s2 }
 0x287   :  { %v1158_v11 = vld [vmem:[%s3126_s22] sm:$0x1] }
 0x288   :  { %2260 = vpow2.f32 %v1764_v13 }
 0x28a   :  { %s1277_s8 = scalar_lea.vmem %s3069_s3, %s3132_s30  ;;  %s2422_s30 = scalar_lea.vmem %s1644_s12, 128 }
 0x28b   :  { %v1105_v42 = vld [vmem:[#allocation2] sm:$0x1]  ;;  %v1144_v45 = vld [vmem:[#allocation2 + $0x1] sm:$0x1]  ;;  %v1181_v47 = vld [vmem:[#allocation2 + $0x2] sm:$0x1]  ;;  %s1351_s7 = scalar_lea.vmem %s3069_s3, %s3134_s21  ;;  %p2423_p9 = scmp.ne.s32.totalorder %s1644_s12, %s2422_s30 }
 0x28c   :  { %v1218_v49 = vld [vmem:[#allocation2 + $0x3] sm:$0x1]  ;;  %v1292_v54 = vld [vmem:[#allocation2 + $0x5] sm:$0x1]  ;;  %v1329_v56 = vld [vmem:[#allocation2 + $0x6] sm:$0x1]  ;;  %v1106_v12 = vmul.f32 %v1105_v42, %v1104_v41  ;;  %v1145_v13 = vmul.f32 %v1144_v45, %v1142_v43  ;;  %p2428_p11 = scmp.lt.s32.totalorder %s2422_s30, %s2422_s30 }
 0x28d   :  { %v1366_v61 = vld [vmem:[#allocation2 + $0x7] sm:$0x1] }
 0x28e   :  { %p2429_p12 = por %p2428_p11, %p2427_p10 }
 0x290   :  { %p2430_p13 = pnand %p2429_p12, %p2423_p9 }
 0x292   :  { %v2261_v15 = vpop.eup %2260 }
 0x293   :  { %v603_v16 = vadd.f32 1.0, %v2261_v15 }
 0x295   :  { %2262 = vrcp.f32 %v603_v16 }
 0x29f   :  { %v2263_v17 = vpop.eup %2262 }
 0x2a0   :  { %v606_v19 = vmul.f32 %v2263_v17, %v595_v10  ;;  %v1121_v10 = vld [vmem:[%s3125_s20] sm:$0x1]  ;;  %s3135_s20 = sld [smem:[#allocation36_spill]] }
 0x2a1   :  { %v1195_v17 = vld [vmem:[%s1194_s4] sm:$0x1] }
 0x2a2   :  { %v609_v20 = vmul.f32 %v608_v18, %v606_v19  ;;  %v1232_v18 = vld [vmem:[%s1231_s26] sm:$0x1]  ;;  %s3130_s26 = sld [smem:[#allocation32_spill]] }
 0x2a3   :  { %v838_v21 = vpop.f32.mrb[8].mxu1  ;;  %v1269_v19 = vld [vmem:[%s1268_s13] sm:$0x1]  ;;  %s3131_s13 = sld [smem:[#allocation33_spill]] }
 0x2a4   :  { %611 = vst [vmem:[#allocation2 + $0x8] sm:$0xff] %v609_v20  ;;  %v839_v22 = vadd.f32 %v2733_v53, %v838_v21  ;;  %v2064_v23 = vpop.f32.mrb[9].mxu1  ;;  %v1306_v20 = vld [vmem:[%s1305_s6] sm:$0x1] }
 0x2a5   :  { %v841_v24 = vpop.f32.mrb[10].mxu1  ;;  %v1219_v23 = vmul.f32 %v1218_v49, %v1216_v48 }
 0x2a6   :  { %v1784_v25 = vmul.f32 -1.442695, %v839_v22  ;;  %v2065_v26 = vpop.f32.mrb[11].mxu1 }
 0x2a8   :  { %2264 = vpow2.f32 %v1784_v25  ;;  %v1293_v25 = vmul.f32 %v1292_v54, %v1290_v51  ;;  %s1203_s16 = scalar_lea.vmem %s3069_s3, %s3130_s26 }
 0x2a9   :  { %s1240_s25 = scalar_lea.vmem %s3069_s3, %s3131_s13  ;;  %s3136_s13 = sld [smem:[#allocation37_spill]] }
 0x2ab   :  { %v1114_v62 = vld [vmem:[#allocation2 + $0x8] sm:$0x1]  ;;  %v1152_v63 = vld [vmem:[#allocation2 + $0x9] sm:$0x1]  ;;  %v1189_v5 = vld [vmem:[#allocation2 + $0xa] sm:$0x1] }
 0x2ac   :  { %v1226_v6 = vld [vmem:[#allocation2 + $0xb] sm:$0x1]  ;;  %v1263_v7 = vld [vmem:[#allocation2 + $0xc] sm:$0x1]  ;;  %v1300_v14 = vld [vmem:[#allocation2 + $0xd] sm:$0x1] }
 0x2ad   :  { %v1337_v15 = vld [vmem:[#allocation2 + $0xe] sm:$0x1]  ;;  %v1374_v16 = vld [vmem:[#allocation2 + $0xf] sm:$0x1] }
 0x2ae   :  { %v1338_v42 = vmul.f32 %v1337_v15, %v1334_v8  ;;  %v1375_v43 = vmul.f32 %v1374_v16, %v1371_v9 }
 0x2b2   :  { %v2265_v27 = vpop.eup %2264 }
 0x2b3   :  { %v847_v28 = vadd.f32 1.0, %v2265_v27 }
 0x2b5   :  { %2266 = vrcp.f32 %v847_v28 }
 0x2bf   :  { %v2267_v29 = vpop.eup %2266 }
 0x2c0   :  { %v850_v31 = vmul.f32 %v2267_v29, %v839_v22  ;;  %v1182_v22 = vmul.f32 %v1181_v47, %v1179_v46  ;;  %v1330_v29 = vmul.f32 %v1329_v56, %v1327_v55  ;;  %v1380_v46 = vld [vmem:[%s1379_s28] sm:$0x1]  ;;  %s1388_s28 = scalar_lea.vmem %s3069_s3, %s3135_s20 }
 0x2c1   :  { %v1131_v56 = vld [vmem:[%s1130_s14] sm:$0x1]  ;;  %s3137_s14 = sld [smem:[#allocation38_spill]] }
 0x2c2   :  { %v853_v32 = vmul.f32 %v852_v30, %v850_v31  ;;  %v1115_v30 = vmul.f32 %v1114_v62, %v1111_v57  ;;  %v1153_v31 = vmul.f32 %v1152_v63, %v1149_v58  ;;  %v1167_v57 = vld [vmem:[%s1166_s1] sm:$0x1] }
 0x2c3   :  { %v1082_v33 = vpop.f32.mrb[12].mxu1  ;;  %v1204_v62 = vld [vmem:[%s1203_s16] sm:$0x1] }
 0x2c4   :  { %855 = vst [vmem:[#allocation2 + $0x10] sm:$0xff] %v853_v32  ;;  %v2749_v34 = vadd.f32 %v2733_v53, %v1082_v33  ;;  %v2104_v35 = vpop.f32.mrb[13].mxu1  ;;  %v1255_v53 = vld [vmem:[#allocation2 + $0x4] sm:$0x1]  ;;  %v1190_v32 = vmul.f32 %v1189_v5, %v1186_v59  ;;  %v1241_v63 = vld [vmem:[%s1240_s25] sm:$0x1] }
 0x2c5   :  { %v1085_v36 = vpop.f32.mrb[14].mxu1  ;;  %v1256_v24 = vmul.f32 %v1255_v53, %v1253_v50  ;;  %v1154_v53 = vadd.f32 %v1153_v31, %v1145_v13  ;;  %v1389_v8 = vld [vmem:[%s1388_s28] sm:$0x1] }
 0x2c6   :  { %v1804_v37 = vmul.f32 -1.442695, %v2749_v34  ;;  %v2105_v38 = vpop.f32.mrb[15].mxu1  ;;  %v1367_v36 = vmul.f32 %v1366_v61, %v1364_v60  ;;  %v1191_v54 = vadd.f32 %v1190_v32, %v1182_v22 }
 0x2c7   :  { %v1264_v38 = vmul.f32 %v1263_v7, %v1260_v2  ;;  %v1339_v2 = vadd.f32 %v1338_v42, %v1330_v29  ;;  %v1352_v7 = vld [vmem:[%s1351_s7] sm:$0x1]  ;;  %v2233_v42 = vld [vmem:[#allocation15 + $0x8] sm:$0xff]  }
 0x2c8   :  { %2268 = vpow2.f32 %v1804_v37  ;;  %v1227_v37 = vmul.f32 %v1226_v6, %v1223_v1  ;;  %v1278_v1 = vld [vmem:[%s1277_s8] sm:$0x1] }
 0x2c9   :  { %v1265_v59 = vadd.f32 %v1264_v38, %v1256_v24  ;;  %v1315_v6 = vld [vmem:[%s1314_s19] sm:$0x1] }
 0x2ca   :  { %v1228_v58 = vadd.f32 %v1227_v37, %v1219_v23 }
 0x2cb   :  { %v1124_v26 = vld [vmem:[#allocation2 + $0x10] sm:$0x1]  ;;  %v1161_v27 = vld [vmem:[#allocation2 + $0x11] sm:$0x1]  ;;  %v1198_v28 = vld [vmem:[#allocation2 + $0x12] sm:$0x1] }
 0x2cc   :  { %v1235_v33 = vld [vmem:[#allocation2 + $0x13] sm:$0x1]  ;;  %v1309_v35 = vld [vmem:[#allocation2 + $0x15] sm:$0x1]  ;;  %v1346_v41 = vld [vmem:[#allocation2 + $0x16] sm:$0x1]  ;;  %v1162_v45 = vmul.f32 %v1161_v27, %v1158_v11  ;;  %v1199_v48 = vmul.f32 %v1198_v28, %v1195_v17 }
 0x2cd   :  { %v1383_v47 = vld [vmem:[#allocation2 + $0x17] sm:$0x1]  ;;  %v1236_v49 = vmul.f32 %v1235_v33, %v1232_v18  ;;  %v1310_v51 = vmul.f32 %v1309_v35, %v1306_v20 }
 0x2ce   :  { %v1384_v61 = vmul.f32 %v1383_v47, %v1380_v46  ;;  %v1163_v5 = vadd.f32 %v1162_v45, %v1154_v53  ;;  %v1200_v9 = vadd.f32 %v1199_v48, %v1191_v54  ;;  %v2236_v45 = vld [vmem:[#allocation15 + $0x20] sm:$0xff]   ;;  %v2237_v46 = vld [vmem:[#allocation15 + $0x28] sm:$0xff]   ;;  %v2238_v47 = vld [vmem:[#allocation15 + $0x30] sm:$0xff]  }
 0x2cf   :  { %v2239_v48 = vld [vmem:[#allocation15 + $0x38] sm:$0xff]  }
 0x2d2   :  { %v2269_v39 = vpop.eup %2268 }
 0x2d3   :  { %v1091_v40 = vadd.f32 1.0, %v2269_v39  ;;  %v1301_v39 = vmul.f32 %v1300_v14, %v1297_v3  ;;  %v1376_v3 = vadd.f32 %v1375_v43, %v1367_v36  ;;  %v2234_v43 = vld [vmem:[#allocation15 + $0x10] sm:$0xff]  }
 0x2d5   :  { %2270 = vrcp.f32 %v1091_v40  ;;  %v1343_v40 = vld [vmem:[%s1342_s9] sm:$0x1]  ;;  %v1302_v60 = vadd.f32 %v1301_v39, %v1293_v25  ;;  %v1385_v23 = vadd.f32 %v1384_v61, %v1376_v3 }
 0x2d6   :  { %v1347_v55 = vmul.f32 %v1346_v41, %v1343_v40  ;;  %v2232_v41 = vld [vmem:[#allocation15] sm:$0xff]  }
 0x2d7   :  { %2127 = vmatpush3.bf16.msra.mxu1 %v2232_v41 }
 0x2d8   :  { %v1348_v16 = vadd.f32 %v1347_v55, %v1339_v2  ;;  %2128 = vmatprep.subr.bf16.mxu1 %v2467_v0 }
 0x2db   :  { %2129 = vmatpush3.bf16.msra.mxu1 %v2233_v42 }
 0x2dc   :  { %2130 = vmatprep.subr.bf16.mxu1 %v2467_v0 }
 0x2df   :  { %v2271_v52 = vpop.eup %2270  ;;  %2131 = vmatpush3.bf16.msra.mxu1 %v2234_v43 }
 0x2e0   :  { %v1094_v4 = vmul.f32 %v2271_v52, %v2749_v34  ;;  %v1272_v34 = vld [vmem:[#allocation2 + $0x14] sm:$0x1]  ;;  %v1116_v52 = vadd.f32 %v1115_v30, %v1106_v12  ;;  %v1311_v12 = vadd.f32 %v1310_v51, %v1302_v60  ;;  %2132 = vmatprep.subr.bf16.mxu1 %v2467_v0 }
 0x2e1   :  { %v1273_v50 = vmul.f32 %v1272_v34, %v1269_v19 }
 0x2e2   :  { %v1097_v21 = vmul.f32 %v1096_v44, %v1094_v4  ;;  %v1125_v44 = vmul.f32 %v1124_v26, %v1121_v10  ;;  %v1237_v10 = vadd.f32 %v1236_v49, %v1228_v58  ;;  %v1836_v49 = vld [vmem:[%s3136_s13] ss:$0 sm:$0xff] }
 0x2e3   :  { %v1274_v11 = vadd.f32 %v1273_v50, %v1265_v59 }
 0x2e4   :  { %1099 = vst [vmem:[#allocation2 + $0x18] sm:$0xff] %v1097_v21  ;;  %v1126_v4 = vadd.f32 %v1125_v44, %v1116_v52  ;;  %v2235_v44 = vld [vmem:[#allocation15 + $0x18] sm:$0xff]  }
 0x2e5   :  { %2133 = vmatpush3.bf16.msra.mxu1 %v2235_v44 }
 0x2e6   :  { %2134 = vmatprep.subr.bf16.mxu1 %v2467_v0 }
 0x2e9   :  { %2135 = vmatpush3.bf16.msra.mxu1 %v2236_v45 }
 0x2ea   :  { %2136 = vmatprep.subr.bf16.mxu1 %v2467_v0 }
 0x2eb   :  { %v1134_v13 = vld [vmem:[#allocation2 + $0x18] sm:$0x1]  ;;  %v1170_v14 = vld [vmem:[#allocation2 + $0x19] sm:$0x1]  ;;  %v1207_v15 = vld [vmem:[#allocation2 + $0x1a] sm:$0x1] }
 0x2ec   :  { %v1135_v17 = vmul.f32 %v1134_v13, %v1131_v56  ;;  %v1171_v18 = vmul.f32 %v1170_v14, %v1167_v57  ;;  %v1208_v19 = vmul.f32 %v1207_v15, %v1204_v62  ;;  %v1244_v20 = vld [vmem:[#allocation2 + $0x1b] sm:$0x1]  ;;  %v1281_v21 = vld [vmem:[#allocation2 + $0x1c] sm:$0x1]  ;;  %v1318_v22 = vld [vmem:[#allocation2 + $0x1d] sm:$0x1] }
 0x2ed   :  { %v1245_v24 = vmul.f32 %v1244_v20, %v1241_v63  ;;  %v1282_v25 = vmul.f32 %v1281_v21, %v1278_v1  ;;  %v1319_v26 = vmul.f32 %v1318_v22, %v1315_v6  ;;  %v1355_v27 = vld [vmem:[#allocation2 + $0x1e] sm:$0x1]  ;;  %v1392_v28 = vld [vmem:[#allocation2 + $0x1f] sm:$0x1]  ;;  %2137 = vmatpush3.bf16.msra.mxu1 %v2237_v46 }
 0x2ee   :  { %v1136_v29 = vadd.f32 %v1135_v17, %v1126_v4  ;;  %v1172_v30 = vadd.f32 %v1171_v18, %v1163_v5  ;;  %v1209_v31 = vadd.f32 %v1208_v19, %v1200_v9  ;;  %v1356_v32 = vmul.f32 %v1355_v27, %v1352_v7  ;;  %2138 = vmatprep.subr.bf16.mxu1 %v2467_v0 }
 0x2ef   :  { %v1246_v33 = vadd.f32 %v1245_v24, %v1237_v10  ;;  %v1283_v34 = vadd.f32 %v1282_v25, %v1274_v11  ;;  %v1320_v35 = vadd.f32 %v1319_v26, %v1311_v12  ;;  %v1393_v36 = vmul.f32 %v1392_v28, %v1389_v8 }
 0x2f0   :  { %v1357_v37 = vadd.f32 %v1356_v32, %v1348_v16  ;;  %1137 = vst [vmem:[#allocation3] sm:$0x1] %v1136_v29  ;;  %1174 = vst [vmem:[#allocation3 + $0x1] sm:$0x1] %v1172_v30 }
 0x2f1   :  { %1211 = vst [vmem:[#allocation3 + $0x2] sm:$0x1] %v1209_v31  ;;  %v1394_v38 = vadd.f32 %v1393_v36, %v1385_v23  ;;  %1248 = vst [vmem:[#allocation3 + $0x3] sm:$0x1] %v1246_v33  ;;  %2139 = vmatpush3.bf16.msra.mxu1 %v2238_v47 }
 0x2f2   :  { %1285 = vst [vmem:[#allocation3 + $0x4] sm:$0x1] %v1283_v34  ;;  %1322 = vst [vmem:[#allocation3 + $0x5] sm:$0x1] %v1320_v35  ;;  %2140 = vmatprep.subr.bf16.mxu1 %v2467_v0  ;;  %v1846_v0 = vld [vmem:[%s3137_s14] ss:$0 sm:$0xff] }
 0x2f3   :  { %1359 = vst [vmem:[#allocation3 + $0x6] sm:$0x1] %v1357_v37  ;;  %1396 = vst [vmem:[#allocation3 + $0x7] sm:$0x1] %v1394_v38 }
 0x2f5   :  { %2141 = vmatpush3.bf16.msra.mxu1 %v2239_v48 }
 0x2fa   :  { %v1397_v39 = vld [vmem:[#allocation3] sm:$0xff] }
 0x2fb   :  { %v1398_v40 = vpack.c.bf16 %v1397_v39, %v1397_v39 }
 0x2fd   :  { %2123 = vmatmul.mubr.bf16.vlgmr.msra.gmra.mrb[16].mxu0 %v1398_v40 }
 0x3d0   :  { %v1504_v50 = vpop.f32.mrb[16].mxu0 }
 0x3d1   :  { %v1505_v51 = vadd.f32 %v1836_v49, %v1504_v50  ;;  %v2124_v52 = vpop.f32.mrb[17].mxu0 }
 0x3d2   :  { %v1507_v53 = vpop.f32.mrb[18].mxu0 }
 0x3d3   :  { %v1845_v54 = vmul.f32 -1.442695, %v1505_v51  ;;  %v2125_v55 = vpop.f32.mrb[19].mxu0 }
 0x3d5   :  { %2272 = vpow2.f32 %v1845_v54 }
 0x3df   :  { %v2273_v56 = vpop.eup %2272 }
 0x3e0   :  { %v1513_v57 = vadd.f32 1.0, %v2273_v56 }
 0x3e2   :  { %2274 = vrcp.f32 %v1513_v57 }
 0x3ec   :  { %v2275_v58 = vpop.eup %2274 }
 0x3ed   :  { %v1516_v59 = vmul.f32 %v2275_v58, %v1505_v51 }
 0x3ef   :  { %v1517_v60 = vpack.c.bf16 %v1516_v59, %v1516_v59 }
 0x3f1   :  { %2143 = vmatmul.mubr.bf16.vlgmr.msra.gmra.mrb[16].mxu1 %v1517_v60 }
 0x4c4   :  { %v1623_v61 = vpop.f32.mrb[16].mxu1 }
 0x4c5   :  { %v1624_v62 = vadd.f32 %v1846_v0, %v1623_v61  ;;  %v2144_v63 = vpop.f32.mrb[17].mxu1 }
 0x4c6   :  { %v1626_v1 = vpop.f32.mrb[18].mxu1 }
 0x4c7   :  { %v1855_v2 = vmul.f32 -1.442695, %v1624_v62  ;;  %v2145_v3 = vpop.f32.mrb[19].mxu1 }
 0x4c9   :  { %2276 = vpow2.f32 %v1855_v2 }
 0x4d3   :  { %v2277_v4 = vpop.eup %2276 }
 0x4d4   :  { %v1632_v5 = vadd.f32 1.0, %v2277_v4 }
 0x4d6   :  { %2278 = vrcp.f32 %v1632_v5 }
 0x4e0   :  { %v2279_v6 = vpop.eup %2278 }
 0x4e1   :  { %v1635_v7 = vmul.f32 %v2279_v6, %v1624_v62 }
 0x4e3   :  { %1636 = vst [vmem:[#allocation17] sm:$0xff] %v1635_v7 }
 0x4e4   :  { %2433 = shalt.err (!%p2430_p13)
}
 0x4e5   :  { %s3138_s21 = sld [smem:[#allocation39_spill]] }
 0x4eb   :  { %s2434_s11 = scalar_lea.hbm %s3138_s21, 128 }
 0x4ec   :  { %p2435_p0 = scmp.ne.s32.totalorder %s3138_s21, %s2434_s11  ;;  %p2438_p1 = scmp.lt.u32.totalorder %s2434_s11, %s3138_s21 }
 0x4ee   :  { %p2440_p2 = pnand %p2438_p1, %p2435_p0 }
 0x4f0   :  { %2443 = shalt.err (!%p2440_p2)
}
 0x4f1   :  { %1646 = dma.vmem_to_hbm [thread:$0]  %s1644_s12, 128, %s3138_s21, [#allocation8]  }
 0x4f2   :  { %2454 = dma.done.wait [#allocation8], 128  }
 0x4f3   :  { %2455 = vsyncadd [#allocation8], 4294967168 }
 0x4f4   :  { %1650 = vsyncpa [#allocation7], 1 }
 0x4f5   :  { %1651 = vsyncpa [#allocation10], 1 }
 0x4f6   :  { %1652 = vsyncpa [#allocation13], 1 }
 0x4f7   :  { %1653 = vsyncpa [#allocation16], 1 }
 0x4f8   :  { %1654 = vsyncpa [#allocation8], 1 }

</bundles_post_ra>
